<compile_context>
chip_gen: v5e
topology: v5e:2x2
jax: 0.10.0
libtpu: 0.0.40
codegen_flags: <defaults>
</compile_context>

<pallas_src>
import functools

import jax
import jax.numpy as jnp
from jax import lax
from jax.experimental import pallas as pl
from jax.experimental.pallas import tpu as pltpu


def _make_kernel(d_model: int, head: int, eps: float = 1e-6):
    d_k = d_model // head

    def kernel(tgt_q_ref, tgt_kv_ref, src_ref, tbias_ref, sbias_ref,
               wq_s_ref, wkv_s_ref, wo_s_ref, bq_s_ref, bkv_s_ref, bo_s_ref,
               wq_c_ref, wkv_c_ref, wo_c_ref, bq_c_ref, bkv_c_ref, bo_c_ref,
               w1_ref, b1_ref, w2_ref, b2_ref, gamma_ref, beta_ref,
               out_ref):
        f32 = jnp.float32
        bf16 = jnp.bfloat16
        scale = f32(1.0 / (d_k ** 0.5))

        tgt_q = tgt_q_ref[...]                 # (TQ, D)  f32 query rows
        tgt_kv = tgt_kv_ref[...]               # (S_t, D) f32 full tgt (K/V src)
        src = src_ref[...]                     # (S_s, D) f32 encoder output
        tbias = tbias_ref[...].astype(f32)     # (TQ, S_t) additive mask bias
        sbias = sbias_ref[...].astype(f32)     # (TQ, S_s) additive mask bias

        def mha(q_in, kv_in, bias, wq_ref, wkv_ref, wo_ref,
                bq_ref, bkv_ref, bo_ref):
            # Q projection of the query tile; fused K|V projection of the
            # full key/value sequence (single MXU call, N = 2*D).
            q = jnp.dot(q_in.astype(bf16), wq_ref[...],
                        preferred_element_type=f32) + bq_ref[...]
            kv = jnp.dot(kv_in.astype(bf16), wkv_ref[...],
                         preferred_element_type=f32) + bkv_ref[...]
            k = kv[:, :d_model]
            v = kv[:, d_model:]

            n_q = q.shape[0]
            o = jnp.zeros((n_q, d_model), f32)
            for h in range(head):              # static unrolled loop over heads
                qh = q[:, h * d_k:(h + 1) * d_k].astype(bf16)
                kh = k[:, h * d_k:(h + 1) * d_k].astype(bf16)
                vh = v[:, h * d_k:(h + 1) * d_k].astype(bf16)
                # NT contraction: (TQ, d_k) x (S_k, d_k) -> (TQ, S_k), no .T
                s = lax.dot_general(qh, kh, (((1,), (1,)), ((), ())),
                                    preferred_element_type=f32)
                s = s * scale + bias
                s = s - jnp.max(s, axis=-1, keepdims=True)
                p = jnp.exp(s)
                p = p * pl.reciprocal(jnp.sum(p, axis=-1, keepdims=True),
                                      approx=True)
                oh = jnp.dot(p.astype(bf16), vh, preferred_element_type=f32)
                # accumulate directly into the output projection: no concat
                o = o + jnp.dot(oh.astype(bf16), wo_ref[h],
                                preferred_element_type=f32)
            return o + bo_ref[...]

        def layer_norm(x, idx):
            gamma = gamma_ref[idx:idx + 1, :]          # (1, D) static slice
            beta = beta_ref[idx:idx + 1, :]            # (1, D) static slice
            mean = jnp.mean(x, axis=-1, keepdims=True)
            var = jnp.mean((x - mean) ** 2, axis=-1, keepdims=True)
            return (x - mean) * lax.rsqrt(var + eps) * gamma + beta

        # Masked self-attention + residual + norm
        a1 = mha(tgt_q, tgt_kv, tbias, wq_s_ref, wkv_s_ref, wo_s_ref,
                 bq_s_ref, bkv_s_ref, bo_s_ref)
        x1 = layer_norm(a1 + tgt_q, 0)
        # Cross-attention + residual + norm
        a2 = mha(x1, src, sbias, wq_c_ref, wkv_c_ref, wo_c_ref,
                 bq_c_ref, bkv_c_ref, bo_c_ref)
        x2 = layer_norm(a2 + x1, 1)
        # FFN + norm (no residual, matching the reference module)
        hdn = jnp.dot(x2.astype(bf16), w1_ref[...],
                      preferred_element_type=f32) + b1_ref[...]
        hdn = jnp.maximum(hdn, 0.0)
        ffn = jnp.dot(hdn.astype(bf16), w2_ref[...],
                      preferred_element_type=f32) + b2_ref[...]
        out_ref[...] = layer_norm(ffn, 2)

    return kernel


def decoder_layer_pallas(src, tgt, src_tgt_mask, tgt_mask, params,
                         d_model: int, head: int, tq: int | None = None):
    """Fused decoder layer. Grid = (batch, query tiles)."""
    B, S_t, D = tgt.shape
    _, S_s, _ = src.shape
    d_ff = params["w1"].shape[-1]
    d_k = d_model // head
    bf16 = jnp.bfloat16

    if tq is None:
        tq = S_t if S_t <= 256 else 256
    assert S_t % tq == 0, "S_t must be divisible by the query tile size"
    nq = S_t // tq

    # Masks -> compact additive bf16 bias: 0.0 = keep, -1e9 = masked.
    tgt_bias = jnp.where(tgt_mask == 0.0, -1e9, 0.0).astype(bf16)
    st_bias = jnp.where(src_tgt_mask == 0.0, -1e9, 0.0).astype(bf16)

    # Repack attention weights: Wq, fused Wkv=(D,2D), Wo as (head, d_k, D).
    def pack_attn(w, b):
        wq = w[0].astype(bf16)
        wkv = jnp.concatenate([w[1], w[2]], axis=-1).astype(bf16)
        wo = w[3].reshape(head, d_k, d_model).astype(bf16)
        bq = b[0].reshape(1, d_model)
        bkv = jnp.concatenate([b[1], b[2]], axis=-1).reshape(1, 2 * d_model)
        bo = b[3].reshape(1, d_model)
        return wq, wkv, wo, bq, bkv, bo

    wq_s, wkv_s, wo_s, bq_s, bkv_s, bo_s = pack_attn(params["w_self"],
                                                     params["b_self"])
    wq_c, wkv_c, wo_c, bq_c, bkv_c, bo_c = pack_attn(params["w_cross"],
                                                     params["b_cross"])
    w1 = params["w1"].astype(bf16)
    b1 = params["b1"].reshape(1, d_ff)
    w2 = params["w2"].astype(bf16)
    b2 = params["b2"].reshape(1, d_model)

    kernel = _make_kernel(d_model, head)

    def whole(shape):
        nd = len(shape)
        return pl.BlockSpec(shape, lambda b, q, _nd=nd: (0,) * _nd)

    grid_spec = pltpu.PrefetchScalarGridSpec(
        num_scalar_prefetch=0,
        grid=(B, nq),
        in_specs=[
            pl.BlockSpec((None, tq, D), lambda b, q: (b, q, 0)),    # tgt query tile
            pl.BlockSpec((None, S_t, D), lambda b, q: (b, 0, 0)),   # tgt full (K/V)
            pl.BlockSpec((None, S_s, D), lambda b, q: (b, 0, 0)),   # src full (K/V)
            pl.BlockSpec((None, tq, S_t), lambda b, q: (b, q, 0)),  # self-attn bias
            pl.BlockSpec((None, tq, S_s), lambda b, q: (b, q, 0)),  # cross-attn bias
            whole((D, D)), whole((D, 2 * D)), whole((head, d_k, D)),      # self W
            whole((1, D)), whole((1, 2 * D)), whole((1, D)),              # self b
            whole((D, D)), whole((D, 2 * D)), whole((head, d_k, D)),      # cross W
            whole((1, D)), whole((1, 2 * D)), whole((1, D)),              # cross b
            whole((D, d_ff)), whole((1, d_ff)),                           # FFN 1
            whole((d_ff, D)), whole((1, D)),                              # FFN 2
            whole((3, D)), whole((3, D)),                                 # LN gamma/beta
        ],
        out_specs=pl.BlockSpec((None, tq, D), lambda b, q: (b, q, 0)),
    )

    return pl.pallas_call(
        kernel,
        out_shape=jax.ShapeDtypeStruct((B, S_t, D), jnp.float32),
        grid_spec=grid_spec,
        compiler_params=pltpu.CompilerParams(
            dimension_semantics=("parallel", "parallel"),
            vmem_limit_bytes=48 * 1024 * 1024),
    )(tgt, tgt, src, tgt_bias, st_bias,
      wq_s, wkv_s, wo_s, bq_s, bkv_s, bo_s,
      wq_c, wkv_c, wo_c, bq_c, bkv_c, bo_c,
      w1, b1, w2, b2,
      params["gammas"], params["betas"])


# ---------------------------------------------------------------------------
# Pure-JAX f32 reference (same math) for a correctness sanity check.
# ---------------------------------------------------------------------------
def decoder_layer_ref(src, tgt, src_tgt_mask, tgt_mask, params, d_model, head):
    d_k = d_model // head
    eps = 1e-6

    def mha(q_in, kv_in, mask, w, b):
        q = q_in @ w[0] + b[0]
        k = kv_in @ w[1] + b[1]
        v = kv_in @ w[2] + b[2]
        B, Sq, D = q.shape
        Sk = k.shape[1]
        qh = q.reshape(B, Sq, head, d_k).transpose(0, 2, 1, 3)
        kh = k.reshape(B, Sk, head, d_k).transpose(0, 2, 1, 3)
        vh = v.reshape(B, Sk, head, d_k).transpose(0, 2, 1, 3)
        s = jnp.einsum("bhqd,bhkd->bhqk", qh, kh) / jnp.sqrt(jnp.float32(d_k))
        s = jnp.where(mask[:, None, :, :] == 0.0, -1e9, s)
        p = jax.nn.softmax(s, axis=-1)
        o = jnp.einsum("bhqk,bhkd->bhqd", p, vh)
        o = o.transpose(0, 2, 1, 3).reshape(B, Sq, D)
        return o @ w[3] + b[3]

    def ln(x, idx):
        m = jnp.mean(x, axis=-1, keepdims=True)
        v = jnp.mean((x - m) ** 2, axis=-1, keepdims=True)
        return ((x - m) * jax.lax.rsqrt(v + eps)
                * params["gammas"][idx] + params["betas"][idx])

    x1 = ln(mha(tgt, tgt, tgt_mask, params["w_self"], params["b_self"]) + tgt, 0)
    x2 = ln(mha(x1, src, src_tgt_mask, params["w_cross"], params["b_cross"]) + x1, 1)
    h = jnp.maximum(x2 @ params["w1"] + params["b1"], 0.0)
    f = h @ params["w2"] + params["b2"]
    return ln(f, 2)


if __name__ == "__main__":
    B, S_t, S_s = 2, 8, 8
    d_model, head = 32, 4
    d_ff = 4 * d_model

    key = jax.random.PRNGKey(0)
    ks = jax.random.split(key, 12)

    tgt = jax.random.normal(ks[0], (B, S_t, d_model), jnp.float32)
    src = jax.random.normal(ks[1], (B, S_s, d_model), jnp.float32)
    # causal mask for self-attention, full visibility for cross-attention
    tgt_mask = jnp.broadcast_to(
        jnp.tril(jnp.ones((S_t, S_t), jnp.float32)), (B, S_t, S_t))
    src_tgt_mask = jnp.ones((B, S_t, S_s), jnp.float32)

    s = 0.05
    params = {
        "w_self": s * jax.random.normal(ks[2], (4, d_model, d_model), jnp.float32),
        "b_self": s * jax.random.normal(ks[3], (4, d_model), jnp.float32),
        "w_cross": s * jax.random.normal(ks[4], (4, d_model, d_model), jnp.float32),
        "b_cross": s * jax.random.normal(ks[5], (4, d_model), jnp.float32),
        "w1": s * jax.random.normal(ks[6], (d_model, d_ff), jnp.float32),
        "b1": s * jax.random.normal(ks[7], (1, d_ff), jnp.float32),
        "w2": s * jax.random.normal(ks[8], (d_ff, d_model), jnp.float32),
        "b2": s * jax.random.normal(ks[9], (1, d_model), jnp.float32),
        "gammas": jnp.ones((3, d_model), jnp.float32)
                  + s * jax.random.normal(ks[10], (3, d_model), jnp.float32),
        "betas": s * jax.random.normal(ks[11], (3, d_model), jnp.float32),
    }

    run = jax.jit(functools.partial(decoder_layer_pallas,
                                    d_model=d_model, head=head))
    out = run(src, tgt, src_tgt_mask, tgt_mask, params)
    out = jax.block_until_ready(out)

    ref = decoder_layer_ref(src, tgt, src_tgt_mask, tgt_mask, params,
                            d_model, head)
    assert out.shape == (B, S_t, d_model)
    # bf16 MXU inputs + approx reciprocal => small deviation from f32 reference
    assert jnp.allclose(out, ref, atol=5e-2, rtol=5e-2), (
        f"max abs diff {jnp.max(jnp.abs(out - ref))}")

    print("KERNEL_OK")
</pallas_src>

<mosaic_0001>
module attributes {stable_mosaic.version = 11 : i64} {
  func.func @kernel(%arg0: i32, %arg1: i32, %arg2: memref<1x8x32xf32, #tpu.memory_space<vmem>>, %arg3: memref<1x8x32xf32, #tpu.memory_space<vmem>>, %arg4: memref<1x8x32xf32, #tpu.memory_space<vmem>>, %arg5: memref<1x8x8xbf16, #tpu.memory_space<vmem>>, %arg6: memref<1x8x8xbf16, #tpu.memory_space<vmem>>, %arg7: memref<32x32xbf16, #tpu.memory_space<vmem>>, %arg8: memref<32x64xbf16, #tpu.memory_space<vmem>>, %arg9: memref<4x8x32xbf16, #tpu.memory_space<vmem>>, %arg10: memref<1x32xf32, #tpu.memory_space<vmem>>, %arg11: memref<1x64xf32, #tpu.memory_space<vmem>>, %arg12: memref<1x32xf32, #tpu.memory_space<vmem>>, %arg13: memref<32x32xbf16, #tpu.memory_space<vmem>>, %arg14: memref<32x64xbf16, #tpu.memory_space<vmem>>, %arg15: memref<4x8x32xbf16, #tpu.memory_space<vmem>>, %arg16: memref<1x32xf32, #tpu.memory_space<vmem>>, %arg17: memref<1x64xf32, #tpu.memory_space<vmem>>, %arg18: memref<1x32xf32, #tpu.memory_space<vmem>>, %arg19: memref<32x128xbf16, #tpu.memory_space<vmem>>, %arg20: memref<1x128xf32, #tpu.memory_space<vmem>>, %arg21: memref<128x32xbf16, #tpu.memory_space<vmem>>, %arg22: memref<1x32xf32, #tpu.memory_space<vmem>>, %arg23: memref<3x32xf32, #tpu.memory_space<vmem>>, %arg24: memref<3x32xf32, #tpu.memory_space<vmem>>, %arg25: memref<1x8x32xf32, #tpu.memory_space<vmem>>) attributes {dimension_semantics = [#tpu.dimension_semantics<parallel>, #tpu.dimension_semantics<parallel>], iteration_bounds = array<i64: 2, 1>, scalar_prefetch = 0 : i64, scratch_operands = 0 : i64, tpu.core_type = #tpu.core_type<tc>, window_params = [{transform_indices = @transform_0, window_bounds = array<i64: 1, 8, 32>}, {transform_indices = @transform_1, window_bounds = array<i64: 1, 8, 32>}, {transform_indices = @transform_2, window_bounds = array<i64: 1, 8, 32>}, {transform_indices = @transform_3, window_bounds = array<i64: 1, 8, 8>}, {transform_indices = @transform_4, window_bounds = array<i64: 1, 8, 8>}, {pipeline_mode = #tpu.pipeline_mode<synchronous>, transform_indices = @transform_5, window_bounds = array<i64: 32, 32>}, {pipeline_mode = #tpu.pipeline_mode<synchronous>, transform_indices = @transform_6, window_bounds = array<i64: 32, 64>}, {pipeline_mode = #tpu.pipeline_mode<synchronous>, transform_indices = @transform_7, window_bounds = array<i64: 4, 8, 32>}, {pipeline_mode = #tpu.pipeline_mode<synchronous>, transform_indices = @transform_8, window_bounds = array<i64: 1, 32>}, {pipeline_mode = #tpu.pipeline_mode<synchronous>, transform_indices = @transform_9, window_bounds = array<i64: 1, 64>}, {pipeline_mode = #tpu.pipeline_mode<synchronous>, transform_indices = @transform_10, window_bounds = array<i64: 1, 32>}, {pipeline_mode = #tpu.pipeline_mode<synchronous>, transform_indices = @transform_11, window_bounds = array<i64: 32, 32>}, {pipeline_mode = #tpu.pipeline_mode<synchronous>, transform_indices = @transform_12, window_bounds = array<i64: 32, 64>}, {pipeline_mode = #tpu.pipeline_mode<synchronous>, transform_indices = @transform_13, window_bounds = array<i64: 4, 8, 32>}, {pipeline_mode = #tpu.pipeline_mode<synchronous>, transform_indices = @transform_14, window_bounds = array<i64: 1, 32>}, {pipeline_mode = #tpu.pipeline_mode<synchronous>, transform_indices = @transform_15, window_bounds = array<i64: 1, 64>}, {pipeline_mode = #tpu.pipeline_mode<synchronous>, transform_indices = @transform_16, window_bounds = array<i64: 1, 32>}, {pipeline_mode = #tpu.pipeline_mode<synchronous>, transform_indices = @transform_17, window_bounds = array<i64: 32, 128>}, {pipeline_mode = #tpu.pipeline_mode<synchronous>, transform_indices = @transform_18, window_bounds = array<i64: 1, 128>}, {pipeline_mode = #tpu.pipeline_mode<synchronous>, transform_indices = @transform_19, window_bounds = array<i64: 128, 32>}, {pipeline_mode = #tpu.pipeline_mode<synchronous>, transform_indices = @transform_20, window_bounds = array<i64: 1, 32>}, {pipeline_mode = #tpu.pipeline_mode<synchronous>, transform_indices = @transform_21, window_bounds = array<i64: 3, 32>}, {pipeline_mode = #tpu.pipeline_mode<synchronous>, transform_indices = @transform_22, window_bounds = array<i64: 3, 32>}, {transform_indices = @transform_23, window_bounds = array<i64: 1, 8, 32>}]} {
    %c0 = arith.constant 0 : index
    %c0_0 = arith.constant 0 : index
    %c0_1 = arith.constant 0 : index
    %0 = vector.load %arg2[%c0, %c0_0, %c0_1] : memref<1x8x32xf32, #tpu.memory_space<vmem>>, vector<1x8x32xf32>
    %1 = vector.shape_cast %0 : vector<1x8x32xf32> to vector<8x32xf32>
    %c0_2 = arith.constant 0 : index
    %c0_3 = arith.constant 0 : index
    %c0_4 = arith.constant 0 : index
    %2 = vector.load %arg3[%c0_2, %c0_3, %c0_4] : memref<1x8x32xf32, #tpu.memory_space<vmem>>, vector<1x8x32xf32>
    %3 = vector.shape_cast %2 : vector<1x8x32xf32> to vector<8x32xf32>
    %c0_5 = arith.constant 0 : index
    %c0_6 = arith.constant 0 : index
    %c0_7 = arith.constant 0 : index
    %4 = vector.load %arg4[%c0_5, %c0_6, %c0_7] : memref<1x8x32xf32, #tpu.memory_space<vmem>>, vector<1x8x32xf32>
    %5 = vector.shape_cast %4 : vector<1x8x32xf32> to vector<8x32xf32>
    %c0_8 = arith.constant 0 : index
    %c0_9 = arith.constant 0 : index
    %c0_10 = arith.constant 0 : index
    %6 = vector.load %arg5[%c0_8, %c0_9, %c0_10] : memref<1x8x8xbf16, #tpu.memory_space<vmem>>, vector<1x8x8xbf16>
    %7 = vector.shape_cast %6 : vector<1x8x8xbf16> to vector<8x8xbf16>
    %8 = arith.extf %7 : vector<8x8xbf16> to vector<8x8xf32>
    %c0_11 = arith.constant 0 : index
    %c0_12 = arith.constant 0 : index
    %c0_13 = arith.constant 0 : index
    %9 = vector.load %arg6[%c0_11, %c0_12, %c0_13] : memref<1x8x8xbf16, #tpu.memory_space<vmem>>, vector<1x8x8xbf16>
    %10 = vector.shape_cast %9 : vector<1x8x8xbf16> to vector<8x8xbf16>
    %11 = arith.extf %10 : vector<8x8xbf16> to vector<8x8xf32>
    %12 = arith.truncf %1 : vector<8x32xf32> to vector<8x32xbf16>
    %c0_14 = arith.constant 0 : index
    %c0_15 = arith.constant 0 : index
    %13 = vector.load %arg7[%c0_14, %c0_15] : memref<32x32xbf16, #tpu.memory_space<vmem>>, vector<32x32xbf16>
    %cst = arith.constant dense<0.000000e+00> : vector<8x32xf32>
    %14 = tpu.matmul %12, %13, %cst {dimension_numbers = #tpu.dot_dimension_numbers<[1], [0], [0], [1], [0, 0, 1, 1], [], []>} : vector<8x32xbf16>, vector<32x32xbf16>, vector<8x32xf32> -> vector<8x32xf32>
    %c0_16 = arith.constant 0 : index
    %c0_17 = arith.constant 0 : index
    %15 = vector.load %arg10[%c0_16, %c0_17] : memref<1x32xf32, #tpu.memory_space<vmem>>, vector<1x32xf32>
    %16 = vector.broadcast %15 : vector<1x32xf32> to vector<8x32xf32>
    %17 = arith.addf %14, %16 : vector<8x32xf32>
    %18 = arith.truncf %3 : vector<8x32xf32> to vector<8x32xbf16>
    %c0_18 = arith.constant 0 : index
    %c0_19 = arith.constant 0 : index
    %19 = vector.load %arg8[%c0_18, %c0_19] : memref<32x64xbf16, #tpu.memory_space<vmem>>, vector<32x64xbf16>
    %cst_20 = arith.constant dense<0.000000e+00> : vector<8x64xf32>
    %20 = tpu.matmul %18, %19, %cst_20 {dimension_numbers = #tpu.dot_dimension_numbers<[1], [0], [0], [1], [0, 0, 1, 1], [], []>} : vector<8x32xbf16>, vector<32x64xbf16>, vector<8x64xf32> -> vector<8x64xf32>
    %c0_21 = arith.constant 0 : index
    %c0_22 = arith.constant 0 : index
    %21 = vector.load %arg11[%c0_21, %c0_22] : memref<1x64xf32, #tpu.memory_space<vmem>>, vector<1x64xf32>
    %22 = vector.broadcast %21 : vector<1x64xf32> to vector<8x64xf32>
    %23 = arith.addf %20, %22 : vector<8x64xf32>
    %24 = vector.extract_strided_slice %23 {offsets = [0, 0], sizes = [8, 32], strides = [1, 1]} : vector<8x64xf32> to vector<8x32xf32>
    %25 = vector.extract_strided_slice %23 {offsets = [0, 32], sizes = [8, 32], strides = [1, 1]} : vector<8x64xf32> to vector<8x32xf32>
    %cst_23 = arith.constant 0.000000e+00 : f32
    %26 = vector.broadcast %cst_23 : f32 to vector<8x32xf32>
    %27 = vector.extract_strided_slice %17 {offsets = [0, 0], sizes = [8, 8], strides = [1, 1]} : vector<8x32xf32> to vector<8x8xf32>
    %28 = arith.truncf %27 : vector<8x8xf32> to vector<8x8xbf16>
    %29 = vector.extract_strided_slice %24 {offsets = [0, 0], sizes = [8, 8], strides = [1, 1]} : vector<8x32xf32> to vector<8x8xf32>
    %30 = arith.truncf %29 : vector<8x8xf32> to vector<8x8xbf16>
    %31 = vector.extract_strided_slice %25 {offsets = [0, 0], sizes = [8, 8], strides = [1, 1]} : vector<8x32xf32> to vector<8x8xf32>
    %32 = arith.truncf %31 : vector<8x8xf32> to vector<8x8xbf16>
    %cst_24 = arith.constant dense<0.000000e+00> : vector<8x8xf32>
    %33 = tpu.matmul %28, %30, %cst_24 {dimension_numbers = #tpu.dot_dimension_numbers<[1], [1], [0], [0], [0, 0, 1, 0], [], []>} : vector<8x8xbf16>, vector<8x8xbf16>, vector<8x8xf32> -> vector<8x8xf32>
    %cst_25 = arith.constant 0.353553385 : f32
    %34 = vector.broadcast %cst_25 : f32 to vector<8x8xf32>
    %35 = arith.mulf %33, %34 : vector<8x8xf32>
    %36 = arith.addf %35, %8 : vector<8x8xf32>
    %cst_26 = arith.constant dense<0xFF800000> : vector<8xf32>
    %37 = vector.multi_reduction <maximumf>, %36, %cst_26 [1] : vector<8x8xf32> to vector<8xf32>
    %38 = vector.shape_cast %37 : vector<8xf32> to vector<8x1xf32>
    %39 = vector.broadcast %38 : vector<8x1xf32> to vector<8x8xf32>
    %40 = arith.subf %36, %39 : vector<8x8xf32>
    %41 = math.exp %40 : vector<8x8xf32>
    %cst_27 = arith.constant dense<0.000000e+00> : vector<8xf32>
    %42 = vector.multi_reduction <add>, %41, %cst_27 [1] : vector<8x8xf32> to vector<8xf32>
    %43 = vector.shape_cast %42 : vector<8xf32> to vector<8x1xf32>
    %44 = tpu.reciprocal %43 {approx = true} : vector<8x1xf32> -> vector<8x1xf32>
    %45 = vector.broadcast %44 : vector<8x1xf32> to vector<8x8xf32>
    %46 = arith.mulf %41, %45 : vector<8x8xf32>
    %47 = arith.truncf %46 : vector<8x8xf32> to vector<8x8xbf16>
    %cst_28 = arith.constant dense<0.000000e+00> : vector<8x8xf32>
    %48 = tpu.matmul %47, %32, %cst_28 {dimension_numbers = #tpu.dot_dimension_numbers<[1], [0], [0], [1], [0, 0, 1, 1], [], []>} : vector<8x8xbf16>, vector<8x8xbf16>, vector<8x8xf32> -> vector<8x8xf32>
    %49 = arith.truncf %48 : vector<8x8xf32> to vector<8x8xbf16>
    %c0_29 = arith.constant 0 : index
    %c0_30 = arith.constant 0 : index
    %c0_31 = arith.constant 0 : index
    %50 = vector.load %arg9[%c0_29, %c0_30, %c0_31] : memref<4x8x32xbf16, #tpu.memory_space<vmem>>, vector<1x8x32xbf16>
    %51 = vector.shape_cast %50 : vector<1x8x32xbf16> to vector<8x32xbf16>
    %cst_32 = arith.constant dense<0.000000e+00> : vector<8x32xf32>
    %52 = tpu.matmul %49, %51, %cst_32 {dimension_numbers = #tpu.dot_dimension_numbers<[1], [0], [0], [1], [0, 0, 1, 1], [], []>} : vector<8x8xbf16>, vector<8x32xbf16>, vector<8x32xf32> -> vector<8x32xf32>
    %53 = arith.addf %26, %52 : vector<8x32xf32>
    %54 = vector.extract_strided_slice %17 {offsets = [0, 8], sizes = [8, 8], strides = [1, 1]} : vector<8x32xf32> to vector<8x8xf32>
    %55 = arith.truncf %54 : vector<8x8xf32> to vector<8x8xbf16>
    %56 = vector.extract_strided_slice %24 {offsets = [0, 8], sizes = [8, 8], strides = [1, 1]} : vector<8x32xf32> to vector<8x8xf32>
    %57 = arith.truncf %56 : vector<8x8xf32> to vector<8x8xbf16>
    %58 = vector.extract_strided_slice %25 {offsets = [0, 8], sizes = [8, 8], strides = [1, 1]} : vector<8x32xf32> to vector<8x8xf32>
    %59 = arith.truncf %58 : vector<8x8xf32> to vector<8x8xbf16>
    %cst_33 = arith.constant dense<0.000000e+00> : vector<8x8xf32>
    %60 = tpu.matmul %55, %57, %cst_33 {dimension_numbers = #tpu.dot_dimension_numbers<[1], [1], [0], [0], [0, 0, 1, 0], [], []>} : vector<8x8xbf16>, vector<8x8xbf16>, vector<8x8xf32> -> vector<8x8xf32>
    %cst_34 = arith.constant 0.353553385 : f32
    %61 = vector.broadcast %cst_34 : f32 to vector<8x8xf32>
    %62 = arith.mulf %60, %61 : vector<8x8xf32>
    %63 = arith.addf %62, %8 : vector<8x8xf32>
    %cst_35 = arith.constant dense<0xFF800000> : vector<8xf32>
    %64 = vector.multi_reduction <maximumf>, %63, %cst_35 [1] : vector<8x8xf32> to vector<8xf32>
    %65 = vector.shape_cast %64 : vector<8xf32> to vector<8x1xf32>
    %66 = vector.broadcast %65 : vector<8x1xf32> to vector<8x8xf32>
    %67 = arith.subf %63, %66 : vector<8x8xf32>
    %68 = math.exp %67 : vector<8x8xf32>
    %cst_36 = arith.constant dense<0.000000e+00> : vector<8xf32>
    %69 = vector.multi_reduction <add>, %68, %cst_36 [1] : vector<8x8xf32> to vector<8xf32>
    %70 = vector.shape_cast %69 : vector<8xf32> to vector<8x1xf32>
    %71 = tpu.reciprocal %70 {approx = true} : vector<8x1xf32> -> vector<8x1xf32>
    %72 = vector.broadcast %71 : vector<8x1xf32> to vector<8x8xf32>
    %73 = arith.mulf %68, %72 : vector<8x8xf32>
    %74 = arith.truncf %73 : vector<8x8xf32> to vector<8x8xbf16>
    %cst_37 = arith.constant dense<0.000000e+00> : vector<8x8xf32>
    %75 = tpu.matmul %74, %59, %cst_37 {dimension_numbers = #tpu.dot_dimension_numbers<[1], [0], [0], [1], [0, 0, 1, 1], [], []>} : vector<8x8xbf16>, vector<8x8xbf16>, vector<8x8xf32> -> vector<8x8xf32>
    %76 = arith.truncf %75 : vector<8x8xf32> to vector<8x8xbf16>
    %c1 = arith.constant 1 : index
    %c0_38 = arith.constant 0 : index
    %c0_39 = arith.constant 0 : index
    %77 = vector.load %arg9[%c1, %c0_38, %c0_39] : memref<4x8x32xbf16, #tpu.memory_space<vmem>>, vector<1x8x32xbf16>
    %78 = vector.shape_cast %77 : vector<1x8x32xbf16> to vector<8x32xbf16>
    %cst_40 = arith.constant dense<0.000000e+00> : vector<8x32xf32>
    %79 = tpu.matmul %76, %78, %cst_40 {dimension_numbers = #tpu.dot_dimension_numbers<[1], [0], [0], [1], [0, 0, 1, 1], [], []>} : vector<8x8xbf16>, vector<8x32xbf16>, vector<8x32xf32> -> vector<8x32xf32>
    %80 = arith.addf %53, %79 : vector<8x32xf32>
    %81 = vector.extract_strided_slice %17 {offsets = [0, 16], sizes = [8, 8], strides = [1, 1]} : vector<8x32xf32> to vector<8x8xf32>
    %82 = arith.truncf %81 : vector<8x8xf32> to vector<8x8xbf16>
    %83 = vector.extract_strided_slice %24 {offsets = [0, 16], sizes = [8, 8], strides = [1, 1]} : vector<8x32xf32> to vector<8x8xf32>
    %84 = arith.truncf %83 : vector<8x8xf32> to vector<8x8xbf16>
    %85 = vector.extract_strided_slice %25 {offsets = [0, 16], sizes = [8, 8], strides = [1, 1]} : vector<8x32xf32> to vector<8x8xf32>
    %86 = arith.truncf %85 : vector<8x8xf32> to vector<8x8xbf16>
    %cst_41 = arith.constant dense<0.000000e+00> : vector<8x8xf32>
    %87 = tpu.matmul %82, %84, %cst_41 {dimension_numbers = #tpu.dot_dimension_numbers<[1], [1], [0], [0], [0, 0, 1, 0], [], []>} : vector<8x8xbf16>, vector<8x8xbf16>, vector<8x8xf32> -> vector<8x8xf32>
    %cst_42 = arith.constant 0.353553385 : f32
    %88 = vector.broadcast %cst_42 : f32 to vector<8x8xf32>
    %89 = arith.mulf %87, %88 : vector<8x8xf32>
    %90 = arith.addf %89, %8 : vector<8x8xf32>
    %cst_43 = arith.constant dense<0xFF800000> : vector<8xf32>
    %91 = vector.multi_reduction <maximumf>, %90, %cst_43 [1] : vector<8x8xf32> to vector<8xf32>
    %92 = vector.shape_cast %91 : vector<8xf32> to vector<8x1xf32>
    %93 = vector.broadcast %92 : vector<8x1xf32> to vector<8x8xf32>
    %94 = arith.subf %90, %93 : vector<8x8xf32>
    %95 = math.exp %94 : vector<8x8xf32>
    %cst_44 = arith.constant dense<0.000000e+00> : vector<8xf32>
    %96 = vector.multi_reduction <add>, %95, %cst_44 [1] : vector<8x8xf32> to vector<8xf32>
    %97 = vector.shape_cast %96 : vector<8xf32> to vector<8x1xf32>
    %98 = tpu.reciprocal %97 {approx = true} : vector<8x1xf32> -> vector<8x1xf32>
    %99 = vector.broadcast %98 : vector<8x1xf32> to vector<8x8xf32>
    %100 = arith.mulf %95, %99 : vector<8x8xf32>
    %101 = arith.truncf %100 : vector<8x8xf32> to vector<8x8xbf16>
    %cst_45 = arith.constant dense<0.000000e+00> : vector<8x8xf32>
    %102 = tpu.matmul %101, %86, %cst_45 {dimension_numbers = #tpu.dot_dimension_numbers<[1], [0], [0], [1], [0, 0, 1, 1], [], []>} : vector<8x8xbf16>, vector<8x8xbf16>, vector<8x8xf32> -> vector<8x8xf32>
    %103 = arith.truncf %102 : vector<8x8xf32> to vector<8x8xbf16>
    %c2 = arith.constant 2 : index
    %c0_46 = arith.constant 0 : index
    %c0_47 = arith.constant 0 : index
    %104 = vector.load %arg9[%c2, %c0_46, %c0_47] : memref<4x8x32xbf16, #tpu.memory_space<vmem>>, vector<1x8x32xbf16>
    %105 = vector.shape_cast %104 : vector<1x8x32xbf16> to vector<8x32xbf16>
    %cst_48 = arith.constant dense<0.000000e+00> : vector<8x32xf32>
    %106 = tpu.matmul %103, %105, %cst_48 {dimension_numbers = #tpu.dot_dimension_numbers<[1], [0], [0], [1], [0, 0, 1, 1], [], []>} : vector<8x8xbf16>, vector<8x32xbf16>, vector<8x32xf32> -> vector<8x32xf32>
    %107 = arith.addf %80, %106 : vector<8x32xf32>
    %108 = vector.extract_strided_slice %17 {offsets = [0, 24], sizes = [8, 8], strides = [1, 1]} : vector<8x32xf32> to vector<8x8xf32>
    %109 = arith.truncf %108 : vector<8x8xf32> to vector<8x8xbf16>
    %110 = vector.extract_strided_slice %24 {offsets = [0, 24], sizes = [8, 8], strides = [1, 1]} : vector<8x32xf32> to vector<8x8xf32>
    %111 = arith.truncf %110 : vector<8x8xf32> to vector<8x8xbf16>
    %112 = vector.extract_strided_slice %25 {offsets = [0, 24], sizes = [8, 8], strides = [1, 1]} : vector<8x32xf32> to vector<8x8xf32>
    %113 = arith.truncf %112 : vector<8x8xf32> to vector<8x8xbf16>
    %cst_49 = arith.constant dense<0.000000e+00> : vector<8x8xf32>
    %114 = tpu.matmul %109, %111, %cst_49 {dimension_numbers = #tpu.dot_dimension_numbers<[1], [1], [0], [0], [0, 0, 1, 0], [], []>} : vector<8x8xbf16>, vector<8x8xbf16>, vector<8x8xf32> -> vector<8x8xf32>
    %cst_50 = arith.constant 0.353553385 : f32
    %115 = vector.broadcast %cst_50 : f32 to vector<8x8xf32>
    %116 = arith.mulf %114, %115 : vector<8x8xf32>
    %117 = arith.addf %116, %8 : vector<8x8xf32>
    %cst_51 = arith.constant dense<0xFF800000> : vector<8xf32>
    %118 = vector.multi_reduction <maximumf>, %117, %cst_51 [1] : vector<8x8xf32> to vector<8xf32>
    %119 = vector.shape_cast %118 : vector<8xf32> to vector<8x1xf32>
    %120 = vector.broadcast %119 : vector<8x1xf32> to vector<8x8xf32>
    %121 = arith.subf %117, %120 : vector<8x8xf32>
    %122 = math.exp %121 : vector<8x8xf32>
    %cst_52 = arith.constant dense<0.000000e+00> : vector<8xf32>
    %123 = vector.multi_reduction <add>, %122, %cst_52 [1] : vector<8x8xf32> to vector<8xf32>
    %124 = vector.shape_cast %123 : vector<8xf32> to vector<8x1xf32>
    %125 = tpu.reciprocal %124 {approx = true} : vector<8x1xf32> -> vector<8x1xf32>
    %126 = vector.broadcast %125 : vector<8x1xf32> to vector<8x8xf32>
    %127 = arith.mulf %122, %126 : vector<8x8xf32>
    %128 = arith.truncf %127 : vector<8x8xf32> to vector<8x8xbf16>
    %cst_53 = arith.constant dense<0.000000e+00> : vector<8x8xf32>
    %129 = tpu.matmul %128, %113, %cst_53 {dimension_numbers = #tpu.dot_dimension_numbers<[1], [0], [0], [1], [0, 0, 1, 1], [], []>} : vector<8x8xbf16>, vector<8x8xbf16>, vector<8x8xf32> -> vector<8x8xf32>
    %130 = arith.truncf %129 : vector<8x8xf32> to vector<8x8xbf16>
    %c3 = arith.constant 3 : index
    %c0_54 = arith.constant 0 : index
    %c0_55 = arith.constant 0 : index
    %131 = vector.load %arg9[%c3, %c0_54, %c0_55] : memref<4x8x32xbf16, #tpu.memory_space<vmem>>, vector<1x8x32xbf16>
    %132 = vector.shape_cast %131 : vector<1x8x32xbf16> to vector<8x32xbf16>
    %cst_56 = arith.constant dense<0.000000e+00> : vector<8x32xf32>
    %133 = tpu.matmul %130, %132, %cst_56 {dimension_numbers = #tpu.dot_dimension_numbers<[1], [0], [0], [1], [0, 0, 1, 1], [], []>} : vector<8x8xbf16>, vector<8x32xbf16>, vector<8x32xf32> -> vector<8x32xf32>
    %134 = arith.addf %107, %133 : vector<8x32xf32>
    %c0_57 = arith.constant 0 : index
    %c0_58 = arith.constant 0 : index
    %135 = vector.load %arg12[%c0_57, %c0_58] : memref<1x32xf32, #tpu.memory_space<vmem>>, vector<1x32xf32>
    %136 = vector.broadcast %135 : vector<1x32xf32> to vector<8x32xf32>
    %137 = arith.addf %134, %136 : vector<8x32xf32>
    %138 = arith.addf %137, %1 : vector<8x32xf32>
    %c0_59 = arith.constant 0 : index
    %c0_60 = arith.constant 0 : index
    %139 = vector.load %arg23[%c0_59, %c0_60] : memref<3x32xf32, #tpu.memory_space<vmem>>, vector<1x32xf32>
    %c0_61 = arith.constant 0 : index
    %c0_62 = arith.constant 0 : index
    %140 = vector.load %arg24[%c0_61, %c0_62] : memref<3x32xf32, #tpu.memory_space<vmem>>, vector<1x32xf32>
    %cst_63 = arith.constant dense<0.000000e+00> : vector<8xf32>
    %141 = vector.multi_reduction <add>, %138, %cst_63 [1] : vector<8x32xf32> to vector<8xf32>
    %142 = vector.shape_cast %141 : vector<8xf32> to vector<8x1xf32>
    %cst_64 = arith.constant 3.200000e+01 : f32
    %143 = vector.broadcast %cst_64 : f32 to vector<8x1xf32>
    %144 = arith.divf %142, %143 : vector<8x1xf32>
    %145 = vector.broadcast %144 : vector<8x1xf32> to vector<8x32xf32>
    %146 = arith.subf %138, %145 : vector<8x32xf32>
    %147 = arith.mulf %146, %146 : vector<8x32xf32>
    %cst_65 = arith.constant dense<0.000000e+00> : vector<8xf32>
    %148 = vector.multi_reduction <add>, %147, %cst_65 [1] : vector<8x32xf32> to vector<8xf32>
    %149 = vector.shape_cast %148 : vector<8xf32> to vector<8x1xf32>
    %cst_66 = arith.constant 3.200000e+01 : f32
    %150 = vector.broadcast %cst_66 : f32 to vector<8x1xf32>
    %151 = arith.divf %149, %150 : vector<8x1xf32>
    %152 = vector.broadcast %144 : vector<8x1xf32> to vector<8x32xf32>
    %153 = arith.subf %138, %152 : vector<8x32xf32>
    %cst_67 = arith.constant 9.99999997E-7 : f32
    %154 = vector.broadcast %cst_67 : f32 to vector<8x1xf32>
    %155 = arith.addf %151, %154 : vector<8x1xf32>
    %156 = math.rsqrt %155 : vector<8x1xf32>
    %157 = vector.broadcast %156 : vector<8x1xf32> to vector<8x32xf32>
    %158 = arith.mulf %153, %157 : vector<8x32xf32>
    %159 = vector.broadcast %139 : vector<1x32xf32> to vector<8x32xf32>
    %160 = arith.mulf %158, %159 : vector<8x32xf32>
    %161 = vector.broadcast %140 : vector<1x32xf32> to vector<8x32xf32>
    %162 = arith.addf %160, %161 : vector<8x32xf32>
    %163 = arith.truncf %162 : vector<8x32xf32> to vector<8x32xbf16>
    %c0_68 = arith.constant 0 : index
    %c0_69 = arith.constant 0 : index
    %164 = vector.load %arg13[%c0_68, %c0_69] : memref<32x32xbf16, #tpu.memory_space<vmem>>, vector<32x32xbf16>
    %cst_70 = arith.constant dense<0.000000e+00> : vector<8x32xf32>
    %165 = tpu.matmul %163, %164, %cst_70 {dimension_numbers = #tpu.dot_dimension_numbers<[1], [0], [0], [1], [0, 0, 1, 1], [], []>} : vector<8x32xbf16>, vector<32x32xbf16>, vector<8x32xf32> -> vector<8x32xf32>
    %c0_71 = arith.constant 0 : index
    %c0_72 = arith.constant 0 : index
    %166 = vector.load %arg16[%c0_71, %c0_72] : memref<1x32xf32, #tpu.memory_space<vmem>>, vector<1x32xf32>
    %167 = vector.broadcast %166 : vector<1x32xf32> to vector<8x32xf32>
    %168 = arith.addf %165, %167 : vector<8x32xf32>
    %169 = arith.truncf %5 : vector<8x32xf32> to vector<8x32xbf16>
    %c0_73 = arith.constant 0 : index
    %c0_74 = arith.constant 0 : index
    %170 = vector.load %arg14[%c0_73, %c0_74] : memref<32x64xbf16, #tpu.memory_space<vmem>>, vector<32x64xbf16>
    %cst_75 = arith.constant dense<0.000000e+00> : vector<8x64xf32>
    %171 = tpu.matmul %169, %170, %cst_75 {dimension_numbers = #tpu.dot_dimension_numbers<[1], [0], [0], [1], [0, 0, 1, 1], [], []>} : vector<8x32xbf16>, vector<32x64xbf16>, vector<8x64xf32> -> vector<8x64xf32>
    %c0_76 = arith.constant 0 : index
    %c0_77 = arith.constant 0 : index
    %172 = vector.load %arg17[%c0_76, %c0_77] : memref<1x64xf32, #tpu.memory_space<vmem>>, vector<1x64xf32>
    %173 = vector.broadcast %172 : vector<1x64xf32> to vector<8x64xf32>
    %174 = arith.addf %171, %173 : vector<8x64xf32>
    %175 = vector.extract_strided_slice %174 {offsets = [0, 0], sizes = [8, 32], strides = [1, 1]} : vector<8x64xf32> to vector<8x32xf32>
    %176 = vector.extract_strided_slice %174 {offsets = [0, 32], sizes = [8, 32], strides = [1, 1]} : vector<8x64xf32> to vector<8x32xf32>
    %cst_78 = arith.constant 0.000000e+00 : f32
    %177 = vector.broadcast %cst_78 : f32 to vector<8x32xf32>
    %178 = vector.extract_strided_slice %168 {offsets = [0, 0], sizes = [8, 8], strides = [1, 1]} : vector<8x32xf32> to vector<8x8xf32>
    %179 = arith.truncf %178 : vector<8x8xf32> to vector<8x8xbf16>
    %180 = vector.extract_strided_slice %175 {offsets = [0, 0], sizes = [8, 8], strides = [1, 1]} : vector<8x32xf32> to vector<8x8xf32>
    %181 = arith.truncf %180 : vector<8x8xf32> to vector<8x8xbf16>
    %182 = vector.extract_strided_slice %176 {offsets = [0, 0], sizes = [8, 8], strides = [1, 1]} : vector<8x32xf32> to vector<8x8xf32>
    %183 = arith.truncf %182 : vector<8x8xf32> to vector<8x8xbf16>
    %cst_79 = arith.constant dense<0.000000e+00> : vector<8x8xf32>
    %184 = tpu.matmul %179, %181, %cst_79 {dimension_numbers = #tpu.dot_dimension_numbers<[1], [1], [0], [0], [0, 0, 1, 0], [], []>} : vector<8x8xbf16>, vector<8x8xbf16>, vector<8x8xf32> -> vector<8x8xf32>
    %cst_80 = arith.constant 0.353553385 : f32
    %185 = vector.broadcast %cst_80 : f32 to vector<8x8xf32>
    %186 = arith.mulf %184, %185 : vector<8x8xf32>
    %187 = arith.addf %186, %11 : vector<8x8xf32>
    %cst_81 = arith.constant dense<0xFF800000> : vector<8xf32>
    %188 = vector.multi_reduction <maximumf>, %187, %cst_81 [1] : vector<8x8xf32> to vector<8xf32>
    %189 = vector.shape_cast %188 : vector<8xf32> to vector<8x1xf32>
    %190 = vector.broadcast %189 : vector<8x1xf32> to vector<8x8xf32>
    %191 = arith.subf %187, %190 : vector<8x8xf32>
    %192 = math.exp %191 : vector<8x8xf32>
    %cst_82 = arith.constant dense<0.000000e+00> : vector<8xf32>
    %193 = vector.multi_reduction <add>, %192, %cst_82 [1] : vector<8x8xf32> to vector<8xf32>
    %194 = vector.shape_cast %193 : vector<8xf32> to vector<8x1xf32>
    %195 = tpu.reciprocal %194 {approx = true} : vector<8x1xf32> -> vector<8x1xf32>
    %196 = vector.broadcast %195 : vector<8x1xf32> to vector<8x8xf32>
    %197 = arith.mulf %192, %196 : vector<8x8xf32>
    %198 = arith.truncf %197 : vector<8x8xf32> to vector<8x8xbf16>
    %cst_83 = arith.constant dense<0.000000e+00> : vector<8x8xf32>
    %199 = tpu.matmul %198, %183, %cst_83 {dimension_numbers = #tpu.dot_dimension_numbers<[1], [0], [0], [1], [0, 0, 1, 1], [], []>} : vector<8x8xbf16>, vector<8x8xbf16>, vector<8x8xf32> -> vector<8x8xf32>
    %200 = arith.truncf %199 : vector<8x8xf32> to vector<8x8xbf16>
    %c0_84 = arith.constant 0 : index
    %c0_85 = arith.constant 0 : index
    %c0_86 = arith.constant 0 : index
    %201 = vector.load %arg15[%c0_84, %c0_85, %c0_86] : memref<4x8x32xbf16, #tpu.memory_space<vmem>>, vector<1x8x32xbf16>
    %202 = vector.shape_cast %201 : vector<1x8x32xbf16> to vector<8x32xbf16>
    %cst_87 = arith.constant dense<0.000000e+00> : vector<8x32xf32>
    %203 = tpu.matmul %200, %202, %cst_87 {dimension_numbers = #tpu.dot_dimension_numbers<[1], [0], [0], [1], [0, 0, 1, 1], [], []>} : vector<8x8xbf16>, vector<8x32xbf16>, vector<8x32xf32> -> vector<8x32xf32>
    %204 = arith.addf %177, %203 : vector<8x32xf32>
    %205 = vector.extract_strided_slice %168 {offsets = [0, 8], sizes = [8, 8], strides = [1, 1]} : vector<8x32xf32> to vector<8x8xf32>
    %206 = arith.truncf %205 : vector<8x8xf32> to vector<8x8xbf16>
    %207 = vector.extract_strided_slice %175 {offsets = [0, 8], sizes = [8, 8], strides = [1, 1]} : vector<8x32xf32> to vector<8x8xf32>
    %208 = arith.truncf %207 : vector<8x8xf32> to vector<8x8xbf16>
    %209 = vector.extract_strided_slice %176 {offsets = [0, 8], sizes = [8, 8], strides = [1, 1]} : vector<8x32xf32> to vector<8x8xf32>
    %210 = arith.truncf %209 : vector<8x8xf32> to vector<8x8xbf16>
    %cst_88 = arith.constant dense<0.000000e+00> : vector<8x8xf32>
    %211 = tpu.matmul %206, %208, %cst_88 {dimension_numbers = #tpu.dot_dimension_numbers<[1], [1], [0], [0], [0, 0, 1, 0], [], []>} : vector<8x8xbf16>, vector<8x8xbf16>, vector<8x8xf32> -> vector<8x8xf32>
    %cst_89 = arith.constant 0.353553385 : f32
    %212 = vector.broadcast %cst_89 : f32 to vector<8x8xf32>
    %213 = arith.mulf %211, %212 : vector<8x8xf32>
    %214 = arith.addf %213, %11 : vector<8x8xf32>
    %cst_90 = arith.constant dense<0xFF800000> : vector<8xf32>
    %215 = vector.multi_reduction <maximumf>, %214, %cst_90 [1] : vector<8x8xf32> to vector<8xf32>
    %216 = vector.shape_cast %215 : vector<8xf32> to vector<8x1xf32>
    %217 = vector.broadcast %216 : vector<8x1xf32> to vector<8x8xf32>
    %218 = arith.subf %214, %217 : vector<8x8xf32>
    %219 = math.exp %218 : vector<8x8xf32>
    %cst_91 = arith.constant dense<0.000000e+00> : vector<8xf32>
    %220 = vector.multi_reduction <add>, %219, %cst_91 [1] : vector<8x8xf32> to vector<8xf32>
    %221 = vector.shape_cast %220 : vector<8xf32> to vector<8x1xf32>
    %222 = tpu.reciprocal %221 {approx = true} : vector<8x1xf32> -> vector<8x1xf32>
    %223 = vector.broadcast %222 : vector<8x1xf32> to vector<8x8xf32>
    %224 = arith.mulf %219, %223 : vector<8x8xf32>
    %225 = arith.truncf %224 : vector<8x8xf32> to vector<8x8xbf16>
    %cst_92 = arith.constant dense<0.000000e+00> : vector<8x8xf32>
    %226 = tpu.matmul %225, %210, %cst_92 {dimension_numbers = #tpu.dot_dimension_numbers<[1], [0], [0], [1], [0, 0, 1, 1], [], []>} : vector<8x8xbf16>, vector<8x8xbf16>, vector<8x8xf32> -> vector<8x8xf32>
    %227 = arith.truncf %226 : vector<8x8xf32> to vector<8x8xbf16>
    %c1_93 = arith.constant 1 : index
    %c0_94 = arith.constant 0 : index
    %c0_95 = arith.constant 0 : index
    %228 = vector.load %arg15[%c1_93, %c0_94, %c0_95] : memref<4x8x32xbf16, #tpu.memory_space<vmem>>, vector<1x8x32xbf16>
    %229 = vector.shape_cast %228 : vector<1x8x32xbf16> to vector<8x32xbf16>
    %cst_96 = arith.constant dense<0.000000e+00> : vector<8x32xf32>
    %230 = tpu.matmul %227, %229, %cst_96 {dimension_numbers = #tpu.dot_dimension_numbers<[1], [0], [0], [1], [0, 0, 1, 1], [], []>} : vector<8x8xbf16>, vector<8x32xbf16>, vector<8x32xf32> -> vector<8x32xf32>
    %231 = arith.addf %204, %230 : vector<8x32xf32>
    %232 = vector.extract_strided_slice %168 {offsets = [0, 16], sizes = [8, 8], strides = [1, 1]} : vector<8x32xf32> to vector<8x8xf32>
    %233 = arith.truncf %232 : vector<8x8xf32> to vector<8x8xbf16>
    %234 = vector.extract_strided_slice %175 {offsets = [0, 16], sizes = [8, 8], strides = [1, 1]} : vector<8x32xf32> to vector<8x8xf32>
    %235 = arith.truncf %234 : vector<8x8xf32> to vector<8x8xbf16>
    %236 = vector.extract_strided_slice %176 {offsets = [0, 16], sizes = [8, 8], strides = [1, 1]} : vector<8x32xf32> to vector<8x8xf32>
    %237 = arith.truncf %236 : vector<8x8xf32> to vector<8x8xbf16>
    %cst_97 = arith.constant dense<0.000000e+00> : vector<8x8xf32>
    %238 = tpu.matmul %233, %235, %cst_97 {dimension_numbers = #tpu.dot_dimension_numbers<[1], [1], [0], [0], [0, 0, 1, 0], [], []>} : vector<8x8xbf16>, vector<8x8xbf16>, vector<8x8xf32> -> vector<8x8xf32>
    %cst_98 = arith.constant 0.353553385 : f32
    %239 = vector.broadcast %cst_98 : f32 to vector<8x8xf32>
    %240 = arith.mulf %238, %239 : vector<8x8xf32>
    %241 = arith.addf %240, %11 : vector<8x8xf32>
    %cst_99 = arith.constant dense<0xFF800000> : vector<8xf32>
    %242 = vector.multi_reduction <maximumf>, %241, %cst_99 [1] : vector<8x8xf32> to vector<8xf32>
    %243 = vector.shape_cast %242 : vector<8xf32> to vector<8x1xf32>
    %244 = vector.broadcast %243 : vector<8x1xf32> to vector<8x8xf32>
    %245 = arith.subf %241, %244 : vector<8x8xf32>
    %246 = math.exp %245 : vector<8x8xf32>
    %cst_100 = arith.constant dense<0.000000e+00> : vector<8xf32>
    %247 = vector.multi_reduction <add>, %246, %cst_100 [1] : vector<8x8xf32> to vector<8xf32>
    %248 = vector.shape_cast %247 : vector<8xf32> to vector<8x1xf32>
    %249 = tpu.reciprocal %248 {approx = true} : vector<8x1xf32> -> vector<8x1xf32>
    %250 = vector.broadcast %249 : vector<8x1xf32> to vector<8x8xf32>
    %251 = arith.mulf %246, %250 : vector<8x8xf32>
    %252 = arith.truncf %251 : vector<8x8xf32> to vector<8x8xbf16>
    %cst_101 = arith.constant dense<0.000000e+00> : vector<8x8xf32>
    %253 = tpu.matmul %252, %237, %cst_101 {dimension_numbers = #tpu.dot_dimension_numbers<[1], [0], [0], [1], [0, 0, 1, 1], [], []>} : vector<8x8xbf16>, vector<8x8xbf16>, vector<8x8xf32> -> vector<8x8xf32>
    %254 = arith.truncf %253 : vector<8x8xf32> to vector<8x8xbf16>
    %c2_102 = arith.constant 2 : index
    %c0_103 = arith.constant 0 : index
    %c0_104 = arith.constant 0 : index
    %255 = vector.load %arg15[%c2_102, %c0_103, %c0_104] : memref<4x8x32xbf16, #tpu.memory_space<vmem>>, vector<1x8x32xbf16>
    %256 = vector.shape_cast %255 : vector<1x8x32xbf16> to vector<8x32xbf16>
    %cst_105 = arith.constant dense<0.000000e+00> : vector<8x32xf32>
    %257 = tpu.matmul %254, %256, %cst_105 {dimension_numbers = #tpu.dot_dimension_numbers<[1], [0], [0], [1], [0, 0, 1, 1], [], []>} : vector<8x8xbf16>, vector<8x32xbf16>, vector<8x32xf32> -> vector<8x32xf32>
    %258 = arith.addf %231, %257 : vector<8x32xf32>
    %259 = vector.extract_strided_slice %168 {offsets = [0, 24], sizes = [8, 8], strides = [1, 1]} : vector<8x32xf32> to vector<8x8xf32>
    %260 = arith.truncf %259 : vector<8x8xf32> to vector<8x8xbf16>
    %261 = vector.extract_strided_slice %175 {offsets = [0, 24], sizes = [8, 8], strides = [1, 1]} : vector<8x32xf32> to vector<8x8xf32>
    %262 = arith.truncf %261 : vector<8x8xf32> to vector<8x8xbf16>
    %263 = vector.extract_strided_slice %176 {offsets = [0, 24], sizes = [8, 8], strides = [1, 1]} : vector<8x32xf32> to vector<8x8xf32>
    %264 = arith.truncf %263 : vector<8x8xf32> to vector<8x8xbf16>
    %cst_106 = arith.constant dense<0.000000e+00> : vector<8x8xf32>
    %265 = tpu.matmul %260, %262, %cst_106 {dimension_numbers = #tpu.dot_dimension_numbers<[1], [1], [0], [0], [0, 0, 1, 0], [], []>} : vector<8x8xbf16>, vector<8x8xbf16>, vector<8x8xf32> -> vector<8x8xf32>
    %cst_107 = arith.constant 0.353553385 : f32
    %266 = vector.broadcast %cst_107 : f32 to vector<8x8xf32>
    %267 = arith.mulf %265, %266 : vector<8x8xf32>
    %268 = arith.addf %267, %11 : vector<8x8xf32>
    %cst_108 = arith.constant dense<0xFF800000> : vector<8xf32>
    %269 = vector.multi_reduction <maximumf>, %268, %cst_108 [1] : vector<8x8xf32> to vector<8xf32>
    %270 = vector.shape_cast %269 : vector<8xf32> to vector<8x1xf32>
    %271 = vector.broadcast %270 : vector<8x1xf32> to vector<8x8xf32>
    %272 = arith.subf %268, %271 : vector<8x8xf32>
    %273 = math.exp %272 : vector<8x8xf32>
    %cst_109 = arith.constant dense<0.000000e+00> : vector<8xf32>
    %274 = vector.multi_reduction <add>, %273, %cst_109 [1] : vector<8x8xf32> to vector<8xf32>
    %275 = vector.shape_cast %274 : vector<8xf32> to vector<8x1xf32>
    %276 = tpu.reciprocal %275 {approx = true} : vector<8x1xf32> -> vector<8x1xf32>
    %277 = vector.broadcast %276 : vector<8x1xf32> to vector<8x8xf32>
    %278 = arith.mulf %273, %277 : vector<8x8xf32>
    %279 = arith.truncf %278 : vector<8x8xf32> to vector<8x8xbf16>
    %cst_110 = arith.constant dense<0.000000e+00> : vector<8x8xf32>
    %280 = tpu.matmul %279, %264, %cst_110 {dimension_numbers = #tpu.dot_dimension_numbers<[1], [0], [0], [1], [0, 0, 1, 1], [], []>} : vector<8x8xbf16>, vector<8x8xbf16>, vector<8x8xf32> -> vector<8x8xf32>
    %281 = arith.truncf %280 : vector<8x8xf32> to vector<8x8xbf16>
    %c3_111 = arith.constant 3 : index
    %c0_112 = arith.constant 0 : index
    %c0_113 = arith.constant 0 : index
    %282 = vector.load %arg15[%c3_111, %c0_112, %c0_113] : memref<4x8x32xbf16, #tpu.memory_space<vmem>>, vector<1x8x32xbf16>
    %283 = vector.shape_cast %282 : vector<1x8x32xbf16> to vector<8x32xbf16>
    %cst_114 = arith.constant dense<0.000000e+00> : vector<8x32xf32>
    %284 = tpu.matmul %281, %283, %cst_114 {dimension_numbers = #tpu.dot_dimension_numbers<[1], [0], [0], [1], [0, 0, 1, 1], [], []>} : vector<8x8xbf16>, vector<8x32xbf16>, vector<8x32xf32> -> vector<8x32xf32>
    %285 = arith.addf %258, %284 : vector<8x32xf32>
    %c0_115 = arith.constant 0 : index
    %c0_116 = arith.constant 0 : index
    %286 = vector.load %arg18[%c0_115, %c0_116] : memref<1x32xf32, #tpu.memory_space<vmem>>, vector<1x32xf32>
    %287 = vector.broadcast %286 : vector<1x32xf32> to vector<8x32xf32>
    %288 = arith.addf %285, %287 : vector<8x32xf32>
    %289 = arith.addf %288, %162 : vector<8x32xf32>
    %c1_117 = arith.constant 1 : index
    %c0_118 = arith.constant 0 : index
    %290 = vector.load %arg23[%c1_117, %c0_118] : memref<3x32xf32, #tpu.memory_space<vmem>>, vector<1x32xf32>
    %c1_119 = arith.constant 1 : index
    %c0_120 = arith.constant 0 : index
    %291 = vector.load %arg24[%c1_119, %c0_120] : memref<3x32xf32, #tpu.memory_space<vmem>>, vector<1x32xf32>
    %cst_121 = arith.constant dense<0.000000e+00> : vector<8xf32>
    %292 = vector.multi_reduction <add>, %289, %cst_121 [1] : vector<8x32xf32> to vector<8xf32>
    %293 = vector.shape_cast %292 : vector<8xf32> to vector<8x1xf32>
    %cst_122 = arith.constant 3.200000e+01 : f32
    %294 = vector.broadcast %cst_122 : f32 to vector<8x1xf32>
    %295 = arith.divf %293, %294 : vector<8x1xf32>
    %296 = vector.broadcast %295 : vector<8x1xf32> to vector<8x32xf32>
    %297 = arith.subf %289, %296 : vector<8x32xf32>
    %298 = arith.mulf %297, %297 : vector<8x32xf32>
    %cst_123 = arith.constant dense<0.000000e+00> : vector<8xf32>
    %299 = vector.multi_reduction <add>, %298, %cst_123 [1] : vector<8x32xf32> to vector<8xf32>
    %300 = vector.shape_cast %299 : vector<8xf32> to vector<8x1xf32>
    %cst_124 = arith.constant 3.200000e+01 : f32
    %301 = vector.broadcast %cst_124 : f32 to vector<8x1xf32>
    %302 = arith.divf %300, %301 : vector<8x1xf32>
    %303 = vector.broadcast %295 : vector<8x1xf32> to vector<8x32xf32>
    %304 = arith.subf %289, %303 : vector<8x32xf32>
    %cst_125 = arith.constant 9.99999997E-7 : f32
    %305 = vector.broadcast %cst_125 : f32 to vector<8x1xf32>
    %306 = arith.addf %302, %305 : vector<8x1xf32>
    %307 = math.rsqrt %306 : vector<8x1xf32>
    %308 = vector.broadcast %307 : vector<8x1xf32> to vector<8x32xf32>
    %309 = arith.mulf %304, %308 : vector<8x32xf32>
    %310 = vector.broadcast %290 : vector<1x32xf32> to vector<8x32xf32>
    %311 = arith.mulf %309, %310 : vector<8x32xf32>
    %312 = vector.broadcast %291 : vector<1x32xf32> to vector<8x32xf32>
    %313 = arith.addf %311, %312 : vector<8x32xf32>
    %314 = arith.truncf %313 : vector<8x32xf32> to vector<8x32xbf16>
    %c0_126 = arith.constant 0 : index
    %c0_127 = arith.constant 0 : index
    %315 = vector.load %arg19[%c0_126, %c0_127] : memref<32x128xbf16, #tpu.memory_space<vmem>>, vector<32x128xbf16>
    %cst_128 = arith.constant dense<0.000000e+00> : vector<8x128xf32>
    %316 = tpu.matmul %314, %315, %cst_128 {dimension_numbers = #tpu.dot_dimension_numbers<[1], [0], [0], [1], [0, 0, 1, 1], [], []>} : vector<8x32xbf16>, vector<32x128xbf16>, vector<8x128xf32> -> vector<8x128xf32>
    %c0_129 = arith.constant 0 : index
    %c0_130 = arith.constant 0 : index
    %317 = vector.load %arg20[%c0_129, %c0_130] : memref<1x128xf32, #tpu.memory_space<vmem>>, vector<1x128xf32>
    %318 = vector.broadcast %317 : vector<1x128xf32> to vector<8x128xf32>
    %319 = arith.addf %316, %318 : vector<8x128xf32>
    %cst_131 = arith.constant 0.000000e+00 : f32
    %320 = vector.broadcast %cst_131 : f32 to vector<8x128xf32>
    %321 = arith.maximumf %319, %320 : vector<8x128xf32>
    %322 = arith.truncf %321 : vector<8x128xf32> to vector<8x128xbf16>
    %c0_132 = arith.constant 0 : index
    %c0_133 = arith.constant 0 : index
    %323 = vector.load %arg21[%c0_132, %c0_133] : memref<128x32xbf16, #tpu.memory_space<vmem>>, vector<128x32xbf16>
    %cst_134 = arith.constant dense<0.000000e+00> : vector<8x32xf32>
    %324 = tpu.matmul %322, %323, %cst_134 {dimension_numbers = #tpu.dot_dimension_numbers<[1], [0], [0], [1], [0, 0, 1, 1], [], []>} : vector<8x128xbf16>, vector<128x32xbf16>, vector<8x32xf32> -> vector<8x32xf32>
    %c0_135 = arith.constant 0 : index
    %c0_136 = arith.constant 0 : index
    %325 = vector.load %arg22[%c0_135, %c0_136] : memref<1x32xf32, #tpu.memory_space<vmem>>, vector<1x32xf32>
    %326 = vector.broadcast %325 : vector<1x32xf32> to vector<8x32xf32>
    %327 = arith.addf %324, %326 : vector<8x32xf32>
    %c2_137 = arith.constant 2 : index
    %c0_138 = arith.constant 0 : index
    %328 = vector.load %arg23[%c2_137, %c0_138] : memref<3x32xf32, #tpu.memory_space<vmem>>, vector<1x32xf32>
    %c2_139 = arith.constant 2 : index
    %c0_140 = arith.constant 0 : index
    %329 = vector.load %arg24[%c2_139, %c0_140] : memref<3x32xf32, #tpu.memory_space<vmem>>, vector<1x32xf32>
    %cst_141 = arith.constant dense<0.000000e+00> : vector<8xf32>
    %330 = vector.multi_reduction <add>, %327, %cst_141 [1] : vector<8x32xf32> to vector<8xf32>
    %331 = vector.shape_cast %330 : vector<8xf32> to vector<8x1xf32>
    %cst_142 = arith.constant 3.200000e+01 : f32
    %332 = vector.broadcast %cst_142 : f32 to vector<8x1xf32>
    %333 = arith.divf %331, %332 : vector<8x1xf32>
    %334 = vector.broadcast %333 : vector<8x1xf32> to vector<8x32xf32>
    %335 = arith.subf %327, %334 : vector<8x32xf32>
    %336 = arith.mulf %335, %335 : vector<8x32xf32>
    %cst_143 = arith.constant dense<0.000000e+00> : vector<8xf32>
    %337 = vector.multi_reduction <add>, %336, %cst_143 [1] : vector<8x32xf32> to vector<8xf32>
    %338 = vector.shape_cast %337 : vector<8xf32> to vector<8x1xf32>
    %cst_144 = arith.constant 3.200000e+01 : f32
    %339 = vector.broadcast %cst_144 : f32 to vector<8x1xf32>
    %340 = arith.divf %338, %339 : vector<8x1xf32>
    %341 = vector.broadcast %333 : vector<8x1xf32> to vector<8x32xf32>
    %342 = arith.subf %327, %341 : vector<8x32xf32>
    %cst_145 = arith.constant 9.99999997E-7 : f32
    %343 = vector.broadcast %cst_145 : f32 to vector<8x1xf32>
    %344 = arith.addf %340, %343 : vector<8x1xf32>
    %345 = math.rsqrt %344 : vector<8x1xf32>
    %346 = vector.broadcast %345 : vector<8x1xf32> to vector<8x32xf32>
    %347 = arith.mulf %342, %346 : vector<8x32xf32>
    %348 = vector.broadcast %328 : vector<1x32xf32> to vector<8x32xf32>
    %349 = arith.mulf %347, %348 : vector<8x32xf32>
    %350 = vector.broadcast %329 : vector<1x32xf32> to vector<8x32xf32>
    %351 = arith.addf %349, %350 : vector<8x32xf32>
    %c0_146 = arith.constant 0 : index
    %c0_147 = arith.constant 0 : index
    %c0_148 = arith.constant 0 : index
    %352 = vector.load %arg25[%c0_146, %c0_147, %c0_148] : memref<1x8x32xf32, #tpu.memory_space<vmem>>, vector<1x8x32xf32>
    %353 = vector.shape_cast %352 : vector<1x8x32xf32> to vector<8x32xf32>
    %354 = vector.shape_cast %351 : vector<8x32xf32> to vector<1x8x32xf32>
    tpu.vector_store %arg25[%c0_146, %c0_147, %c0_148], %354 {strides = array<i32>} : memref<1x8x32xf32, #tpu.memory_space<vmem>>, vector<1x8x32xf32>,
    return
  }
  func.func @transform_0(%arg0: i32, %arg1: i32) -> (i32, i32, i32) {
    %c0_i32 = arith.constant 0 : i32
    %c0_i32_0 = arith.constant 0 : i32
    return %arg0, %arg1, %c0_i32 : i32, i32, i32
  }
  func.func @transform_1(%arg0: i32, %arg1: i32) -> (i32, i32, i32) {
    %c0_i32 = arith.constant 0 : i32
    %c0_i32_0 = arith.constant 0 : i32
    %c0_i32_1 = arith.constant 0 : i32
    return %arg0, %c0_i32, %c0_i32_0 : i32, i32, i32
  }
  func.func @transform_2(%arg0: i32, %arg1: i32) -> (i32, i32, i32) {
    %c0_i32 = arith.constant 0 : i32
    %c0_i32_0 = arith.constant 0 : i32
    %c0_i32_1 = arith.constant 0 : i32
    return %arg0, %c0_i32, %c0_i32_0 : i32, i32, i32
  }
  func.func @transform_3(%arg0: i32, %arg1: i32) -> (i32, i32, i32) {
    %c0_i32 = arith.constant 0 : i32
    %c0_i32_0 = arith.constant 0 : i32
    return %arg0, %arg1, %c0_i32 : i32, i32, i32
  }
  func.func @transform_4(%arg0: i32, %arg1: i32) -> (i32, i32, i32) {
    %c0_i32 = arith.constant 0 : i32
    %c0_i32_0 = arith.constant 0 : i32
    return %arg0, %arg1, %c0_i32 : i32, i32, i32
  }
  func.func @transform_5(%arg0: i32, %arg1: i32) -> (i32, i32) {
    %c0_i32 = arith.constant 0 : i32
    %c0_i32_0 = arith.constant 0 : i32
    %c0_i32_1 = arith.constant 0 : i32
    return %c0_i32, %c0_i32_0 : i32, i32
  }
  func.func @transform_6(%arg0: i32, %arg1: i32) -> (i32, i32) {
    %c0_i32 = arith.constant 0 : i32
    %c0_i32_0 = arith.constant 0 : i32
    %c0_i32_1 = arith.constant 0 : i32
    return %c0_i32, %c0_i32_0 : i32, i32
  }
  func.func @transform_7(%arg0: i32, %arg1: i32) -> (i32, i32, i32) {
    %c0_i32 = arith.constant 0 : i32
    %c0_i32_0 = arith.constant 0 : i32
    %c0_i32_1 = arith.constant 0 : i32
    %c0_i32_2 = arith.constant 0 : i32
    return %c0_i32, %c0_i32_0, %c0_i32_1 : i32, i32, i32
  }
  func.func @transform_8(%arg0: i32, %arg1: i32) -> (i32, i32) {
    %c0_i32 = arith.constant 0 : i32
    %c0_i32_0 = arith.constant 0 : i32
    %c0_i32_1 = arith.constant 0 : i32
    return %c0_i32, %c0_i32_0 : i32, i32
  }
  func.func @transform_9(%arg0: i32, %arg1: i32) -> (i32, i32) {
    %c0_i32 = arith.constant 0 : i32
    %c0_i32_0 = arith.constant 0 : i32
    %c0_i32_1 = arith.constant 0 : i32
    return %c0_i32, %c0_i32_0 : i32, i32
  }
  func.func @transform_10(%arg0: i32, %arg1: i32) -> (i32, i32) {
    %c0_i32 = arith.constant 0 : i32
    %c0_i32_0 = arith.constant 0 : i32
    %c0_i32_1 = arith.constant 0 : i32
    return %c0_i32, %c0_i32_0 : i32, i32
  }
  func.func @transform_11(%arg0: i32, %arg1: i32) -> (i32, i32) {
    %c0_i32 = arith.constant 0 : i32
    %c0_i32_0 = arith.constant 0 : i32
    %c0_i32_1 = arith.constant 0 : i32
    return %c0_i32, %c0_i32_0 : i32, i32
  }
  func.func @transform_12(%arg0: i32, %arg1: i32) -> (i32, i32) {
    %c0_i32 = arith.constant 0 : i32
    %c0_i32_0 = arith.constant 0 : i32
    %c0_i32_1 = arith.constant 0 : i32
    return %c0_i32, %c0_i32_0 : i32, i32
  }
  func.func @transform_13(%arg0: i32, %arg1: i32) -> (i32, i32, i32) {
    %c0_i32 = arith.constant 0 : i32
    %c0_i32_0 = arith.constant 0 : i32
    %c0_i32_1 = arith.constant 0 : i32
    %c0_i32_2 = arith.constant 0 : i32
    return %c0_i32, %c0_i32_0, %c0_i32_1 : i32, i32, i32
  }
  func.func @transform_14(%arg0: i32, %arg1: i32) -> (i32, i32) {
    %c0_i32 = arith.constant 0 : i32
    %c0_i32_0 = arith.constant 0 : i32
    %c0_i32_1 = arith.constant 0 : i32
    return %c0_i32, %c0_i32_0 : i32, i32
  }
  func.func @transform_15(%arg0: i32, %arg1: i32) -> (i32, i32) {
    %c0_i32 = arith.constant 0 : i32
    %c0_i32_0 = arith.constant 0 : i32
    %c0_i32_1 = arith.constant 0 : i32
    return %c0_i32, %c0_i32_0 : i32, i32
  }
  func.func @transform_16(%arg0: i32, %arg1: i32) -> (i32, i32) {
    %c0_i32 = arith.constant 0 : i32
    %c0_i32_0 = arith.constant 0 : i32
    %c0_i32_1 = arith.constant 0 : i32
    return %c0_i32, %c0_i32_0 : i32, i32
  }
  func.func @transform_17(%arg0: i32, %arg1: i32) -> (i32, i32) {
    %c0_i32 = arith.constant 0 : i32
    %c0_i32_0 = arith.constant 0 : i32
    %c0_i32_1 = arith.constant 0 : i32
    return %c0_i32, %c0_i32_0 : i32, i32
  }
  func.func @transform_18(%arg0: i32, %arg1: i32) -> (i32, i32) {
    %c0_i32 = arith.constant 0 : i32
    %c0_i32_0 = arith.constant 0 : i32
    %c0_i32_1 = arith.constant 0 : i32
    return %c0_i32, %c0_i32_0 : i32, i32
  }
  func.func @transform_19(%arg0: i32, %arg1: i32) -> (i32, i32) {
    %c0_i32 = arith.constant 0 : i32
    %c0_i32_0 = arith.constant 0 : i32
    %c0_i32_1 = arith.constant 0 : i32
    return %c0_i32, %c0_i32_0 : i32, i32
  }
  func.func @transform_20(%arg0: i32, %arg1: i32) -> (i32, i32) {
    %c0_i32 = arith.constant 0 : i32
    %c0_i32_0 = arith.constant 0 : i32
    %c0_i32_1 = arith.constant 0 : i32
    return %c0_i32, %c0_i32_0 : i32, i32
  }
  func.func @transform_21(%arg0: i32, %arg1: i32) -> (i32, i32) {
    %c0_i32 = arith.constant 0 : i32
    %c0_i32_0 = arith.constant 0 : i32
    %c0_i32_1 = arith.constant 0 : i32
    return %c0_i32, %c0_i32_0 : i32, i32
  }
  func.func @transform_22(%arg0: i32, %arg1: i32) -> (i32, i32) {
    %c0_i32 = arith.constant 0 : i32
    %c0_i32_0 = arith.constant 0 : i32
    %c0_i32_1 = arith.constant 0 : i32
    return %c0_i32, %c0_i32_0 : i32, i32
  }
  func.func @transform_23(%arg0: i32, %arg1: i32) -> (i32, i32, i32) {
    %c0_i32 = arith.constant 0 : i32
    %c0_i32_0 = arith.constant 0 : i32
    return %arg0, %arg1, %c0_i32 : i32, i32, i32
  }
}

</mosaic_0001>

<bundles_post_ra>
// kernel: decoder_layer_pallas.1
= control target key start
LH: loop header
LB: loop body
LE: loop exit
PB: predicated region body
PF: predicated region fallthrough
CT: control target
= control target key end

     0   :  { %s2841_s0 = inlined_call_operand.vmem [shape: f32[2,8,32], index: 0, kind: input, shape index: {}, may-alias: {0,1}]   ;;  %s2842_s1 = inlined_call_operand.vmem [shape: f32[2,8,32], index: 1, kind: input, shape index: {}, may-alias: {0,1}]   ;;  %s2843_s2 = inlined_call_operand.vmem [shape: f32[2,8,32], index: 2, kind: input, shape index: {}]   ;;  %s2844_s3 = inlined_call_operand.vmem [shape: bf16[2,8,8], index: 3, kind: input, shape index: {}]   ;;  %s2845_s4 = inlined_call_operand.vmem [shape: bf16[2,8,8], index: 4, kind: input, shape index: {}]   ;;  %s2846_s5 = inlined_call_operand.vmem [shape: bf16[32,32], index: 5, kind: input, shape index: {}]   ;;  %s2847_s6 = inlined_call_operand.vmem [shape: bf16[32,64], index: 6, kind: input, shape index: {}]   ;;  %s2848_s7 = inlined_call_operand.vmem [shape: bf16[4,8,32], index: 7, kind: input, shape index: {}]   ;;  %s2849_s8 = inlined_call_operand.vmem [shape: f32[1,32], index: 8, kind: input, shape index: {}]   ;;  %s2850_s9 = inlined_call_operand.vmem [shape: f32[1,64], index: 9, kind: input, shape index: {}]   ;;  %s2851_s10 = inlined_call_operand.vmem [shape: f32[1,32], index: 10, kind: input, shape index: {}]   ;;  %s2852_s11 = inlined_call_operand.vmem [shape: bf16[32,32], index: 11, kind: input, shape index: {}]   ;;  %s2853_s12 = inlined_call_operand.vmem [shape: bf16[32,64], index: 12, kind: input, shape index: {}]   ;;  %s2854_s13 = inlined_call_operand.vmem [shape: bf16[4,8,32], index: 13, kind: input, shape index: {}]   ;;  %s2855_s14 = inlined_call_operand.vmem [shape: f32[1,32], index: 14, kind: input, shape index: {}]   ;;  %s2856_s15 = inlined_call_operand.vmem [shape: f32[1,64], index: 15, kind: input, shape index: {}]   ;;  %s2857_s16 = inlined_call_operand.vmem [shape: f32[1,32], index: 16, kind: input, shape index: {}]   ;;  %s2858_s17 = inlined_call_operand.vmem [shape: bf16[32,128], index: 17, kind: input, shape index: {}]   ;;  %s2859_s18 = inlined_call_operand.vmem [shape: f32[1,128], index: 18, kind: input, shape index: {}]   ;;  %s2860_s19 = inlined_call_operand.vmem [shape: bf16[128,32], index: 19, kind: input, shape index: {}]   ;;  %s2861_s20 = inlined_call_operand.vmem [shape: f32[1,32], index: 20, kind: input, shape index: {}]   ;;  %s2862_s21 = inlined_call_operand.vmem [shape: f32[3,32], index: 21, kind: input, shape index: {}]   ;;  %s2863_s22 = inlined_call_operand.vmem [shape: f32[3,32], index: 22, kind: input, shape index: {}]   ;;  %s2864_s23 = inlined_call_operand.hbm [shape: f32[2,8,32], index: 23, kind: output, shape index: {}]  }
   0x1   :  { %2886 = sst [smem:[#allocation11_spill]] %s2841_s0 }
   0x2   :  { %2887 = sst [smem:[#allocation12_spill]] %s2842_s1 }
   0x3   :  { %2888 = sst [smem:[#allocation13_spill]] %s2843_s2 }
   0x4   :  { %2889 = sst [smem:[#allocation14_spill]] %s2844_s3 }
   0x5   :  { %2890 = sst [smem:[#allocation15_spill]] %s2845_s4 }
   0x6   :  { %2891 = sst [smem:[#allocation16_spill]] %s2846_s5 }
   0x7   :  { %2892 = sst [smem:[#allocation17_spill]] %s2847_s6 }
   0x8   :  { %2893 = sst [smem:[#allocation18_spill]] %s2848_s7 }
   0x9   :  { %2894 = sst [smem:[#allocation19_spill]] %s2849_s8 }
   0xa   :  { %2895 = sst [smem:[#allocation20_spill]] %s2850_s9 }
   0xb   :  { %2896 = sst [smem:[#allocation21_spill]] %s2851_s10 }
   0xc   :  { %2897 = sst [smem:[#allocation22_spill]] %s2864_s23 }
   0xd   :  { %28 = vsyncpa [#allocation3], 0 }
   0xe   :  { %30 = vsyncpa [#allocation3 + $0x1], 0  ;;  %s2453_s4 = smov 0   ;;  %s2455_s30 = smov 0  }
   0xf   :  { %s2457_s24 = smov 0   ;;  %s2459_s25 = smov 0  }
  0x10   :  { %s2461_s5 = smov 0   ;;  %s2463_s1 = smov 0  }
  0x11 LB: > { %2898 = sst [smem:[#allocation5_spill]] %s2303_s4  ;;  %s1988_s26 = sadd.s32 4294967295, %s2323_s1   ;;  %s2323_s1 = sphi %s2463_s1, %s36_s1   ;;  %s2319_s5 = sphi %s2461_s5, %s2933_s5   ;;  %s2315_s25 = sphi %s2459_s25, %s2932_s25   ;;  %s2311_s24 = sphi %s2457_s24, %s2931_s24   ;;  %s2307_s30 = sphi %s2455_s30, %s2935_s30   ;;  %s2303_s4 = sphi %s2453_s4, %s2934_s4  }
  0x12   : > { %2899 = sst [smem:[#allocation6_spill]] %s2311_s24  ;;  %s1989_s2 = sadd.s32 4294967294, %s2323_s1  }
  0x13   : > { %2900 = sst [smem:[#allocation7_spill]] %s2319_s5  ;;  %s48_s6 = sadd.s32 1, %s2319_s5 }
  0x14   : > { %s571_s27 = sadd.s32 1, %s2311_s24  ;;  %p50_p0 = scmp.ge.s32.totalorder %s48_s6, 2 }
  0x15   : > { %p581_p1 = scmp.ne.s32.totalorder %s2311_s24, %s2307_s30  ;;  %p582_p2 = scmp.eq.s32.totalorder %s1988_s26, 1 }
  0x16   : > { %p587_p3 = scmp.ne.s32.totalorder %s2307_s30, %s2303_s4  ;;  %s2937_s6 = smov (%p50_p0, %s48_s6), 0 }
  0x17   : > { %2901 = sst [smem:[#allocation8_spill]] %s2937_s6  ;;  %p2493_p4 = por %p582_p2, %p581_p1 }
  0x18   : > { %p588_p5 = scmp.eq.s32.totalorder %s1989_s2, 1  ;;  %s566_s28 = ssub.s32 %s2319_s5, %s2937_s6 }
  0x19   : > { %p1992_p6 = scmp.ge.s32.totalorder %s2323_s1, 1  ;;  %p569_p7 = scmp.eq.s32.totalorder %s566_s28, 0 }
  0x1a   : > { %p2500_p8 = por %p588_p5, %p587_p3  ;;  %p704_p9 = scmp.lt.s32.totalorder %s2323_s1, 3 }
  0x1b   : > { %s2506_s3 = scalar_select %p569_p7, %s2311_s24, %s571_s27  }
  0x1c   : > { %s2903_s29 = scalar_select %p2500_p8, 1, 0 }
  0x1d   : > { %2905 = sst [smem:[#allocation10_spill]] %s2506_s3  ;;  %p705_p10 = pnand %p1992_p6, %p704_p9 }
  0x1e   : > { %2904 = sst [smem:[#allocation9_spill]] %s2903_s29  ;;  %p792_p11 = scmp.lt.s32.totalorder (!%p705_p10), %s2315_s25, 1 }
  0x1f   : > { %708 = sbr.rel (%p705_p10) target bundleno = 3830 (0xef6), region = 112  ;;  %s2906_s4 = sld [smem:[#allocation16_spill]] (!%p705_p10) }
  0x20   : > { %s2908_s27 = sld [smem:[#allocation17_spill]] (!%p705_p10)  ;;  %s2884_s6 = smov (!%p705_p10), 120  }
  0x21   : > { %s2909_s24 = sld [smem:[#allocation11_spill]] (!%p705_p10)  ;;  %s2875_s29 = smov (!%p705_p10), 96  }
  0x22   : > { %s2910_s0 = sld [smem:[#allocation12_spill]] (!%p705_p10)  ;;  %s2882_s2 = smov (!%p705_p10), 104  }
  0x23   : > { %s2911_s8 = sld [smem:[#allocation19_spill]] (!%p705_p10)  ;;  %s2876_s5 = smov (!%p705_p10), 88  }
  0x24   : > { %s2516_s28 = scalar_select %p792_p11, %s2315_s25, 1  ;;  %vm850_vm0 = vcmask 261120   ;;  %vm906_vm1 = vcmask 64512   ;;  %vm946_vm2 = vcmask 1043456  }
  0x25   : > { %s2907_s23 = smov %s2906_s4  ;;  %v2111_v0 = vld [vmem:[%s2906_s4 + $0x8] sm:$0xff]  ;;  %s2912_s9 = sld [smem:[#allocation20_spill]] }
  0x26   : > { %v2110_v1 = vld [vmem:[%s2907_s23] sm:$0xff]  ;;  %860 = vmatpush.bf16.msra.mxu1 %v2111_v0  ;;  %v2113_v2 = vld [vmem:[%s2908_s27 + $0x8] sm:$0xff]  ;;  %s2522_s3 = sshll.u32 %s2516_s28, 3  ;;  %s2878_s23 = smov 112  }
  0x27   : > { %s798_s4 = scalar_lea.vmem %s2909_s24, %s2522_s3  ;;  %v2112_v5 = vld [vmem:[%s2908_s27] sm:$0xff]  ;;  %s2913_s24 = sld [smem:[#allocation18_spill]] }
  0x28   : > { %v2528_v3 = vld [vmem:[%s798_s4] sm:$0xff]  ;;  %s802_s26 = scalar_lea.vmem %s2910_s0, %s2522_s3  ;;  %s2881_s4 = sshll.u32 %s2516_s28, 2 }
  0x29   : > { %v829_v4 = vpack.c.bf16 %v2528_v3, %v2528_v3  ;;  %v823_v6 = vld [vmem:[%s802_s26] sm:$0xff]  ;;  %s2915_s26 = sld [smem:[#allocation14_spill]]  ;;  %s2877_s0 = smov 80  }
  0x2a   : > { %861 = vmatpush.bf16.msra.mxu1 %v2110_v1  ;;  %v867_v7 = vpack.c.bf16 %v823_v6, %v823_v6  ;;  %v2191_v8 = vld [vmem:[%s2911_s8] ss:$0 sm:$0xff]  ;;  %s2916_s10 = sld [smem:[#allocation21_spill]]  ;;  %s2926_s8 = smov 72  }
  0x2b   : > { %v2192_v13 = vld [vmem:[%s2912_s9] ss:$0 sm:$0xff]  ;;  %s2107_s9 = sshll.u32 %s2315_s25, 3 }
  0x2d   : > { %2007 = vmatmul.msk.bf16.vlgmr.msra.gmra.mxu1 %vm850_vm0, %v829_v4  ;;  %v964_v19 = vld [vmem:[%s2913_s24] sm:$0xf] }
  0x2e   : > { %897 = vmatpush.bf16.msrb.mxu1 %v2113_v2  ;;  %v1050_v20 = vsel %vm946_vm2, %v964_v19, 0 }
  0x32   : > { %898 = vmatpush.bf16.msrb.mxu1 %v2112_v5 }
  0x3d   : > { %2016 = vmatmul.msk.bf16.vlgmr.msrb.gmra.mxu1 %vm850_vm0, %v867_v7 }
  0xaa   : > { %v863_v9 = vpop.f32.mrf.mxu1 }
  0xab   : > { %v864_v10 = vadd.f32 %v2191_v8, %v863_v9 }
  0xad   : > { %v904_v11 = vpack.c.bf16 %v864_v10, %v864_v10 }
  0xaf   : > { %966 = vrot.lane.b32.xlu2 %v904_v11, %s2884_s6 }
  0xb2   : > { %v865_v12 = vpop.f32.mrf.mxu1 }
  0xba   : > { %v900_v14 = vpop.f32.mrf.mxu1 }
  0xbb   : > { %v901_v15 = vadd.f32 %v2192_v13, %v900_v14 }
  0xbd   : > { %v2548_v16 = vpack.c.bf16 %v901_v15, %v901_v15 }
  0xbf   : > { %941 = vrot.lane.b32.xlu1 %v2548_v16, %s2875_s29  ;;  %1148 = vrot.lane.b32.xlu2 %v2548_v16, %s2882_s2  ;;  %v911_v17 = vsel %vm906_vm1, %v2548_v16, 0  ;;  %s2914_s29 = smov %s2913_s24  ;;  %s813_s24 = scalar_lea.vmem %s2915_s26, %s2881_s4 }
  0xc0   : > { %920 = vmatpush.bf16.xpose.msra.mxu2 %v911_v17  ;;  %v825_v28 = vld [vmem:[%s813_s24] sm:$0xf]  ;;  %s2880_s26 = smov 72   ;;  %s2922_s4 = smov 112  }
  0xc1   : > { %v826_v29 = vunpack.c.l.bf16 %v825_v28 }
  0xc2   : > { %v902_v18 = vpop.f32.mrf.mxu1 }
  0xc7   : > { %968 = vrot.lane.b32.xlu1 %v2548_v16, %s2884_s6  ;;  %1065 = vrot.lane.b32.xlu2 %v904_v11, %s2878_s23  ;;  %s2921_s6 = sld [smem:[#allocation15_spill]] }
  0xc8   : > { %2017 = vmatmul.msk.bf16.vlgmr.msra.gmra.mxu2 %vm906_vm1, %v904_v11 }
  0xc9   : > { %1059 = vmatpush.bf16.msrb.mxu2 %v1050_v20 }
  0xcf   : > { %1146 = vrot.lane.b32.xlu1 %v904_v11, %s2882_s2 }
 0x109   : > { %v967_v21 = vpop.permute.xlu2 %966 }
 0x119   : > { %v1149_v22 = vpop.permute.xlu2 %1148 }
 0x11a   : > { %v1154_v23 = vsel %vm906_vm1, %v1149_v22, 0 }
 0x11b   : > { %1163 = vmatpush.bf16.xpose.msra.mxu2 %v1154_v23 }
 0x121   : > { %v1066_v46 = vpop.permute.xlu2 %1065 }
 0x131   : > { %v942_v24 = vpop.permute.xlu1 %941 }
 0x132   : > { %v948_v25 = vsel %vm946_vm2, %v942_v24, 0 }
 0x133   : > { %957 = vmatpush.bf16.msra.mxu3 %v948_v25 }
 0x139   : > { %v969_v26 = vpop.permute.xlu1 %968 }
 0x13a   : > { %v974_v27 = vsel %vm906_vm1, %v969_v26, 0 }
 0x13b   : > { %983 = vmatpush.bf16.xpose.msrb.mxu3 %v974_v27 }
 0x141   : > { %v1147_v52 = vpop.permute.xlu1 %1146 }
 0x14b   : > { %v922_v30 = vpop.f32.mrf.mxu2 }
 0x14c   : > { %v926_v31 = vmul.f32 0.35355338, %v922_v30 }
 0x14e   : > { %v927_v32 = vadd.f32 %v926_v31, %v826_v29 }
 0x150   : > { %v928_v33 = vsel %vm906_vm1, %v927_v32, -inf }
 0x151   : > { %929 = vmax.xlane.f32.xlu0 %v928_v33  ;;  %v2021_v33 = vld [vmem:[%s2914_s29 + $0x4] sm:$0xf] }
 0x153   : > { %v924_v34 = vpop.f32.mrf.mxu2 }
 0x154   : > { %v1031_v34 = vsel %vm946_vm2, %v2021_v33, 0 }
 0x155   : > { %1040 = vmatpush.bf16.msra.mxu1 %v1031_v34 }
 0x1c4   : > { %v930_v35 = vpop.xlane.xlu0 %929 }
 0x1c5   : > { %v931_v36 = vsub.f32 %v927_v32, %v930_v35  ;;  %v2026_v35 = vld [vmem:[%s2914_s29 + $0x8] sm:$0xf] }
 0x1c7   : > { %v932_v37 = vmul.f32 1.442695, %v931_v36 }
 0x1c9   : > { %2205 = vpow2.f32 %v932_v37  ;;  %v1130_v37 = vsel %vm946_vm2, %v2026_v35, 0 }
 0x1ca   : > { %1139 = vmatpush.bf16.msrb.mxu1 %v1130_v37  ;;  %v2196_v37 = vld [vmem:[%s2856_s15] ss:$0 sm:$0xff] }
 0x1cf   : > { %v2206_v38 = vpop.eup %2205 }
 0x1d0   : > { %v934_v39 = vsel %vm906_vm1, %v2206_v38, 0.0 }
 0x1d1   : > { %935 = vadd.xlane.f32.xlu0 %v934_v39 }
 0x1e5   : > { %1067 = vrot.lane.b32.xlu0 %v2548_v16, %s2878_s23  ;;  %s2920_s23 = sshll.u32 %s2516_s28, 2  ;;  %s2923_s28 = smov 96  }
 0x1e6   : > { %s820_s2 = scalar_lea.vmem %s2921_s6, %s2920_s23  ;;  %s789_s23 = sand.u32 1, %s2307_s30  }
 0x1e7   : > { %s1847_s6 = scalar_lea.sflag [#allocation3], %s789_s23 }
 0x244   : > { %v936_v40 = vpop.xlane.xlu0 %935 }
 0x245   : > { %2207 = vrcp.f32 %v936_v40 }
 0x24b   : > { %v2208_v41 = vpop.eup %2207 }
 0x24c   : > { %v938_v42 = vmul.f32 %v2208_v41, %v2206_v38 }
 0x24e   : > { %v939_v43 = vpack.c.bf16 %v938_v42, %v938_v42 }
 0x250   : > { %2018 = vmatmul.msk.bf16.vlgmr.msra.gmra.mxu3 %vm906_vm1, %v939_v43 }
 0x257   : > { %v1068_v44 = vpop.permute.xlu0 %1067 }
 0x258   : > { %v1073_v45 = vsel %vm906_vm1, %v1068_v44, 0 }
 0x259   : > { %1082 = vmatpush.bf16.xpose.msra.mxu3 %v1073_v45 }
 0x260   : > { %2019 = vmatmul.msk.bf16.vlgmr.msrb.gmra.mxu3 %vm906_vm1, %v967_v21 }
 0x270   : > { %2024 = vmatmul.msk.bf16.vlgmr.msra.gmra.mxu3 %vm906_vm1, %v1066_v46 }
 0x2d3   : > { %v959_v47 = vpop.f32.mrf.mxu3 }
 0x2d4   : > { %v963_v48 = vpack.c.bf16 %v959_v47, %v959_v47 }
 0x2d6   : > { %2023 = vmatmul.msk.bf16.vlgmr.msrb.gmra.mxu2 %vm906_vm1, %v963_v48  ;;  %v2030_v48 = vld [vmem:[%s2914_s29 + $0xc] sm:$0xf] }
 0x2db   : > { %v961_v49 = vpop.f32.mrf.mxu3 }
 0x2dc   : > { %v1211_v49 = vsel %vm946_vm2, %v2030_v48, 0 }
 0x2e3   : > { %v985_v50 = vpop.f32.mrf.mxu3 }
 0x2e4   : > { %v989_v51 = vmul.f32 0.35355338, %v985_v50 }
 0x2e6   : > { %2028 = vmatmul.msk.bf16.vlgmr.msra.gmra.mxu2 %vm906_vm1, %v1147_v52  ;;  %v990_v53 = vadd.f32 %v989_v51, %v826_v29 }
 0x2e8   : > { %v991_v54 = vsel %vm906_vm1, %v990_v53, -inf }
 0x2e9   : > { %992 = vmax.xlane.f32.xlu1 %v991_v54 }
 0x2eb   : > { %v987_v55 = vpop.f32.mrf.mxu3 }
 0x2f3   : > { %v1084_v56 = vpop.f32.mrf.mxu3 }
 0x2f4   : > { %v1088_v57 = vmul.f32 0.35355338, %v1084_v56 }
 0x2f6   : > { %v1089_v58 = vadd.f32 %v1088_v57, %v826_v29 }
 0x2f8   : > { %v1090_v59 = vsel %vm906_vm1, %v1089_v58, -inf }
 0x2f9   : > { %1091 = vmax.xlane.f32.xlu0 %v1090_v59  ;;  %v2193_v59 = vld [vmem:[%s2916_s10] ss:$0 sm:$0xff] }
 0x2fb   : > { %v1086_v60 = vpop.f32.mrf.mxu3 }
 0x302   : > { %1003 = vrot.lane.b32.xlu1 %v2548_v16, %s2876_s5  ;;  %s2918_s5 = smov 120  }
 0x359   : > { %v2588_v61 = vpop.f32.mrf.mxu2 }
 0x35c   : > { %v993_v63 = vpop.xlane.xlu1 %992 }
 0x35d   : > { %v994_v0 = vsub.f32 %v990_v53, %v993_v63 }
 0x35f   : > { %v995_v1 = vmul.f32 1.442695, %v994_v0 }
 0x361   : > { %v1063_v62 = vpop.f32.mrf.mxu2  ;;  %2209 = vpow2.f32 %v995_v1 }
 0x367   : > { %v2210_v11 = vpop.eup %2209 }
 0x368   : > { %v997_v14 = vsel %vm906_vm1, %v2210_v11, 0.0 }
 0x369   : > { %v1165_v2 = vpop.f32.mrf.mxu2 }
 0x36a   : > { %v1169_v4 = vmul.f32 0.35355338, %v1165_v2 }
 0x36c   : > { %v1092_v5 = vpop.xlane.xlu0 %1091  ;;  %v1170_v6 = vadd.f32 %v1169_v4, %v826_v29  ;;  %v2332_v4 = vmov 32.0  }
 0x36d   : > { %v1093_v7 = vsub.f32 %v1089_v58, %v1092_v5 }
 0x36e   : > { %v1171_v8 = vsel %vm906_vm1, %v1170_v6, -inf }
 0x36f   : > { %v1094_v9 = vmul.f32 1.442695, %v1093_v7  ;;  %1172 = vmax.xlane.f32.xlu2 %v1171_v8 }
 0x371   : > { %2211 = vpow2.f32 %v1094_v9  ;;  %v1167_v10 = vpop.f32.mrf.mxu2 }
 0x374   : > { %v1004_v12 = vpop.permute.xlu1 %1003 }
 0x375   : > { %v1009_v13 = vsel %vm946_vm2, %v1004_v12, 0 }
 0x376   : > { %1018 = vmatpush.bf16.msra.mxu0 %v1009_v13 }
 0x377   : > { %v2212_v15 = vpop.eup %2211  ;;  %998 = vadd.xlane.f32.xlu2 %v997_v14  ;;  %v2117_v14 = vld [vmem:[%s2853_s12 + $0x8] sm:$0xff] }
 0x378   : > { %v1096_v17 = vsel %vm906_vm1, %v2212_v15, 0.0  ;;  %1335 = vmatpush.bf16.msrb.mxu2 %v2117_v14 }
 0x379   : > { %1097 = vadd.xlane.f32.xlu0 %v1096_v17  ;;  %v2116_v17 = vld [vmem:[%s2853_s12] sm:$0xff] }
 0x37c   : > { %1336 = vmatpush.bf16.msrb.mxu2 %v2116_v17 }
 0x38d   : > { %1102 = vrot.lane.b32.xlu0 %v2548_v16, %s2877_s0  ;;  %s2917_s0 = sld [smem:[#allocation13_spill]] }
 0x393   : > { %s806_s24 = scalar_lea.vmem %s2917_s0, %s2522_s3  ;;  %s2919_s0 = smov 104  }
 0x3e2   : > { %v1173_v18 = vpop.xlane.xlu2 %1172 }
 0x3e3   : > { %v1174_v19 = vsub.f32 %v1170_v6, %v1173_v18 }
 0x3e5   : > { %v1175_v20 = vmul.f32 1.442695, %v1174_v19  ;;  %v2115_v19 = vld [vmem:[%s2852_s11 + $0x8] sm:$0xff] }
 0x3e7   : > { %2213 = vpow2.f32 %v1175_v20  ;;  %v2114_v20 = vld [vmem:[%s2852_s11] sm:$0xff] }
 0x3ea   : > { %v999_v21 = vpop.xlane.xlu2 %998 }
 0x3eb   : > { %2215 = vrcp.f32 %v999_v21 }
 0x3ec   : > { %v1098_v26 = vpop.xlane.xlu0 %1097 }
 0x3ed   : > { %v2214_v22 = vpop.eup %2213  ;;  %2217 = vrcp.f32 %v1098_v26 }
 0x3ee   : > { %v1177_v23 = vsel %vm906_vm1, %v2214_v22, 0.0 }
 0x3ef   : > { %1178 = vadd.xlane.f32.xlu2 %v1177_v23 }
 0x3f1   : > { %v2216_v24 = vpop.eup %2215 }
 0x3f2   : > { %v1001_v25 = vmul.f32 %v2216_v24, %v2210_v11 }
 0x3f3   : > { %v2218_v28 = vpop.eup %2217 }
 0x3f4   : > { %v1002_v27 = vpack.c.bf16 %v1001_v25, %v1001_v25  ;;  %v1100_v30 = vmul.f32 %v2218_v28, %v2212_v15  ;;  %v824_v15 = vld [vmem:[%s806_s24] sm:$0xff]  ;;  %s2925_s24 = smov 88  }
 0x3f5   : > { %v1305_v18 = vpack.c.bf16 %v824_v15, %v824_v15 }
 0x3f6   : > { %2020 = vmatmul.msk.bf16.vlgmr.msra.gmra.mxu0 %vm906_vm1, %v1002_v27  ;;  %v1101_v32 = vpack.c.bf16 %v1100_v30, %v1100_v30  ;;  %v2194_v30 = vld [vmem:[%s2862_s21] ss:$0 sm:$0xff] }
 0x3f7   : > { %2049 = vmatmul.msk.bf16.vlgmr.msrb.gmra.mxu2 %vm850_vm0, %v1305_v18 }
 0x3ff   : > { %v1103_v29 = vpop.permute.xlu0 %1102 }
 0x400   : > { %v1108_v31 = vsel %vm946_vm2, %v1103_v29, 0 }
 0x401   : > { %1117 = vmatpush.bf16.msrb.mxu0 %v1108_v31 }
 0x405   : > { %1220 = vmatpush.bf16.msra.mxu0 %v1211_v49  ;;  %v827_v49 = vld [vmem:[%s820_s2] sm:$0xf] }
 0x406   : > { %2025 = vmatmul.msk.bf16.vlgmr.msrb.gmra.mxu0 %vm906_vm1, %v1101_v32  ;;  %v2195_v32 = vld [vmem:[%s2863_s22] ss:$0 sm:$0xff] }
 0x407   : > { %1183 = vrot.lane.b32.xlu2 %v2548_v16, %s2880_s26  ;;  %s2927_s26 = sld [smem:[#allocation22_spill]] }
 0x462   : > { %v1179_v36 = vpop.xlane.xlu2 %1178 }
 0x463   : > { %2219 = vrcp.f32 %v1179_v36 }
 0x464   : > { %2221 = vrcp.f32 %v2332_v4 }
 0x469   : > { %v2220_v38 = vpop.eup %2219 }
 0x46a   : > { %v1181_v39 = vmul.f32 %v2220_v38, %v2214_v22  ;;  %v1184_v40 = vpop.permute.xlu2 %1183 }
 0x46b   : > { %v1189_v16 = vsel %vm946_vm2, %v1184_v40, 0 }
 0x46c   : > { %v1182_v41 = vpack.c.bf16 %v1181_v39, %v1181_v39  ;;  %1198 = vmatpush.bf16.msrb.mxu3 %v1189_v16 }
 0x46f   : > { %2029 = vmatmul.msk.bf16.vlgmr.msrb.gmra.mxu3 %vm906_vm1, %v1182_v41 }
 0x473   : > { %v1020_v42 = vpop.f32.mrf.mxu0 }
 0x474   : > { %v1024_v43 = vpack.c.bf16 %v1020_v42, %v1020_v42  ;;  %v2197_v42 = vld [vmem:[%s2855_s14] ss:$0 sm:$0xff] }
 0x476   : > { %2022 = vmatmul.msk.bf16.vlgmr.msra.gmra.mxu1 %vm906_vm1, %v1024_v43 }
 0x477   : > { %1298 = vmatpush.bf16.msra.mxu1 %v2115_v19 }
 0x47a   : > { %v1338_v38 = vpop.f32.mrf.mxu2 }
 0x47b   : > { %v1022_v44 = vpop.f32.mrf.mxu0  ;;  %1299 = vmatpush.bf16.msra.mxu1 %v2114_v20  ;;  %v1339_v39 = vadd.f32 %v2196_v37, %v1338_v38 }
 0x47d   : > { %v2661_v40 = vpack.c.bf16 %v1339_v39, %v1339_v39 }
 0x47f   : > { %v1348_v16 = vsel %vm906_vm1, %v2661_v40, 0 }
 0x480   : > { %1357 = vmatpush.bf16.xpose.msra.mxu3 %v1348_v16 }
 0x482   : > { %v1340_v41 = vpop.f32.mrf.mxu2 }
 0x483   : > { %v1119_v45 = vpop.f32.mrf.mxu0 }
 0x484   : > { %v1123_v46 = vpack.c.bf16 %v1119_v45, %v1119_v45 }
 0x486   : > { %2027 = vmatmul.msk.bf16.vlgmr.msrb.gmra.mxu1 %vm906_vm1, %v1123_v46 }
 0x48b   : > { %v1121_v47 = vpop.f32.mrf.mxu0 }
 0x4f2   : > { %v1200_v50 = vpop.f32.mrf.mxu3 }
 0x4f3   : > { %v1204_v51 = vpack.c.bf16 %v1200_v50, %v1200_v50  ;;  %v1042_v52 = vpop.f32.mrf.mxu1  ;;  %v2679_v50 = vunpack.c.l.bf16 %v827_v49 }
 0x4f4   : > { %v1062_v55 = vadd.f32 %v2588_v61, %v1042_v52  ;;  %v2222_v61 = vpop.eup %2221 }
 0x4f5   : > { %2031 = vmatmul.msk.bf16.vlgmr.msra.gmra.mxu0 %vm906_vm1, %v1204_v51  ;;  %v1239_v5 = vmul.f32 32.0, %v2222_v61  ;;  %vm1243_vm3 = vweird.f32 %v2222_v61 }
 0x4f7   : > { %v1240_v6 = vsub.f32 1.0, %v1239_v5 }
 0x4f9   : > { %v1241_v7 = vmul.f32 %v2222_v61, %v1240_v6 }
 0x4fa   : > { %v1202_v53 = vpop.f32.mrf.mxu3 }
 0x4fb   : > { %v1044_v54 = vpop.f32.mrf.mxu1  ;;  %v1242_v8 = vadd.f32 %v2222_v61, %v1241_v7 }
 0x4fd   : > { %v2625_v9 = vsel %vm1243_vm3, %v2222_v61, %v1242_v8  ;;  %v1400_v61 = vld [vmem:[%s2854_s13] sm:$0xf] }
 0x4fe   : > { %v1486_v8 = vsel %vm946_vm2, %v1400_v61, 0  ;;  %v2059_v61 = vld [vmem:[%s2854_s13 + $0x8] sm:$0xf] }
 0x503   : > { %v1141_v56 = vpop.f32.mrf.mxu1 }
 0x504   : > { %v1145_v57 = vadd.f32 %v1141_v56, %v1062_v55 }
 0x50b   : > { %v1143_v58 = vpop.f32.mrf.mxu1 }
 0x572   : > { %v1222_v60 = vpop.f32.mrf.mxu0 }
 0x573   : > { %v1226_v62 = vadd.f32 %v1222_v60, %v1145_v57 }
 0x575   : > { %v1231_v63 = vadd.f32 %v2193_v59, %v1226_v62 }
 0x577   : > { %v1232_v0 = vadd.f32 %v1231_v63, %v2528_v3 }
 0x579   : > { %v1235_v1 = vsel %vm850_vm0, %v1232_v0, 0.0 }
 0x57a   : > { %1236 = vadd.xlane.f32.xlu1 %v1235_v1  ;;  %v1224_v2 = vpop.f32.mrf.mxu0 }
 0x5ed   : > { %v1237_v10 = vpop.xlane.xlu1 %1236 }
 0x5ee   : > { %v1245_v11 = vmul.f32 %v2625_v9, %v1237_v10 }
 0x5f0   : > { %v1246_v12 = vsub.f32 %v1232_v0, %v1245_v11 }
 0x5f2   : > { %v1247_v3 = vmul.f32 %v1246_v12, %v1246_v12 }
 0x5f4   : > { %v1248_v13 = vsel %vm850_vm0, %v1247_v3, 0.0 }
 0x5f5   : > { %1249 = vadd.xlane.f32.xlu2 %v1248_v13 }
 0x60d   : > { %1404 = vrot.lane.b32.xlu2 %v2661_v40, %s2918_s5 }
 0x615   : > { %1584 = vrot.lane.b32.xlu2 %v2661_v40, %s2919_s0 }
 0x668   : > { %v1250_v21 = vpop.xlane.xlu2 %1249 }
 0x669   : > { %v1251_v22 = vmul.f32 %v1250_v21, %v2625_v9 }
 0x66b   : > { %v1252_v23 = vadd.f32 1e-06, %v1251_v22 }
 0x66d   : > { %2223 = vrsqrt.f32 %v1252_v23  ;;  %vm1259_vm5 = vweird.f32 %v1252_v23 }
 0x670   : > { %v1405_v47 = vpop.permute.xlu2 %1404 }
 0x671   : > { %v1410_v48 = vsel %vm906_vm1, %v1405_v47, 0 }
 0x672   : > { %1419 = vmatpush.bf16.xpose.msrb.mxu1 %v1410_v48 }
 0x673   : > { %v2224_v24 = vpop.eup %2223 }
 0x674   : > { %v1254_v25 = vmul.f32 %v2224_v24, %v1252_v23  ;;  %vm1260_vm4 = vweird.f32 %v2224_v24 }
 0x675   : > { %vm1261_vm6 = vmor %vm1259_vm5, %vm1260_vm4 }
 0x676   : > { %v1255_v26 = vmul.f32 %v2224_v24, %v1254_v25 }
 0x678   : > { %v1256_v27 = vmul.f32 0.5, %v1255_v26 }
 0x67a   : > { %v1257_v28 = vsub.f32 1.5, %v1256_v27 }
 0x67c   : > { %v1258_v29 = vmul.f32 %v2224_v24, %v1257_v28 }
 0x67e   : > { %v1262_v31 = vsel %vm1261_vm6, %v2224_v24, %v1258_v29 }
 0x67f   : > { %v1263_v33 = vmul.f32 %v1262_v31, %v1246_v12  ;;  %v1585_v12 = vpop.permute.xlu2 %1584 }
 0x680   : > { %v1590_v13 = vsel %vm906_vm1, %v1585_v12, 0 }
 0x681   : > { %v1265_v34 = vmul.f32 %v2194_v30, %v1263_v33 }
 0x683   : > { %v2653_v35 = vadd.f32 %v2195_v32, %v1265_v34 }
 0x685   : > { %v1268_v36 = vpack.c.bf16 %v2653_v35, %v2653_v35 }
 0x687   : > { %2040 = vmatmul.msk.bf16.vlgmr.msra.gmra.mxu1 %vm850_vm0, %v1268_v36 }
 0x704   : > { %v1301_v43 = vpop.f32.mrf.mxu1 }
 0x705   : > { %v1302_v44 = vadd.f32 %v2197_v42, %v1301_v43 }
 0x707   : > { %v1342_v45 = vpack.c.bf16 %v1302_v44, %v1302_v44 }
 0x709   : > { %2050 = vmatmul.msk.bf16.vlgmr.msra.gmra.mxu3 %vm906_vm1, %v1342_v45 }
 0x70c   : > { %v1303_v46 = vpop.f32.mrf.mxu1 }
 0x78c   : > { %v1359_v51 = vpop.f32.mrf.mxu3 }
 0x78d   : > { %v1363_v52 = vmul.f32 0.35355338, %v1359_v51 }
 0x78f   : > { %v1364_v53 = vadd.f32 %v1363_v52, %v2679_v50 }
 0x791   : > { %v1365_v54 = vsel %vm906_vm1, %v1364_v53, -inf }
 0x792   : > { %1366 = vmax.xlane.f32.xlu0 %v1365_v54  ;;  %v2054_v54 = vld [vmem:[%s2854_s13 + $0x4] sm:$0xf] }
 0x794   : > { %v1361_v55 = vpop.f32.mrf.mxu3 }
 0x795   : > { %v1467_v55 = vsel %vm946_vm2, %v2054_v54, 0 }
 0x796   : > { %1476 = vmatpush.bf16.msrb.mxu3 %v1467_v55 }
 0x7a6   : > { %1402 = vrot.lane.b32.xlu0 %v1342_v45, %s2918_s5  ;;  %s1858_s5 = scalar_lea.hbm %s2927_s26, %s2107_s9 }
 0x7a7   : > { %s1862_s10 = sshll.u32 %s1858_s5, 4  ;;  %s1863_s10 = int_to_ptr.hbm [resolvable:$true] %s1862_s10 }
 0x7a8   : > { %s2259_s2 = sshra.s32 %s1863_s10, 4  ;;  %s2260_s2 = int_to_ptr.hbm [resolvable:$true] %s2259_s2 }
 0x7a9   : > { %s2261_s9 = scalar_lea.hbm %s2260_s2, 8  ;;  %p2266_p1 = scmp.lt.s32.totalorder %s2260_s2, %s2927_s26 }
 0x7aa   : > { %p2262_p12 = scmp.ne.s32.totalorder %s2260_s2, %s2261_s9 }
 0x7ac   : > { %p2263_p13 = pnand %p2262_p12, %p2493_p4 }
 0x7ae   : > { %1501 = vrot.lane.b32.xlu0 %v1342_v45, %s2922_s4  ;;  %p2264_p0 = pneg %p2263_p13 }
 0x805   : > { %v1367_v56 = vpop.xlane.xlu0 %1366 }
 0x806   : > { %v1368_v57 = vsub.f32 %v1364_v53, %v1367_v56 }
 0x808   : > { %v1369_v58 = vmul.f32 1.442695, %v1368_v57 }
 0x80a   : > { %2225 = vpow2.f32 %v1369_v58 }
 0x810   : > { %v2226_v59 = vpop.eup %2225 }
 0x811   : > { %v1371_v60 = vsel %vm906_vm1, %v2226_v59, 0.0 }
 0x812   : > { %1372 = vadd.xlane.f32.xlu1 %v1371_v60 }
 0x818   : > { %v1403_v62 = vpop.permute.xlu0 %1402 }
 0x819   : > { %2052 = vmatmul.msk.bf16.vlgmr.msrb.gmra.mxu1 %vm906_vm1, %v1403_v62 }
 0x820   : > { %v1502_v17 = vpop.permute.xlu0 %1501 }
 0x82b   : > { %1378 = vrot.lane.b32.xlu1 %v2661_v40, %s2923_s28 }
 0x833   : > { %1503 = vrot.lane.b32.xlu1 %v2661_v40, %s2922_s4 }
 0x83b   : > { %1582 = vrot.lane.b32.xlu1 %v1342_v45, %s2919_s0  ;;  %s2924_s0 = smov 80  }
 0x885   : > { %v1373_v63 = vpop.xlane.xlu1 %1372 }
 0x886   : > { %2227 = vrcp.f32 %v1373_v63 }
 0x88c   : > { %v2228_v2 = vpop.eup %2227 }
 0x88d   : > { %v1375_v6 = vmul.f32 %v2228_v2, %v2226_v59 }
 0x88f   : > { %v1376_v3 = vpack.c.bf16 %v1375_v6, %v1375_v6 }
 0x896   : > { %v1421_v0 = vpop.f32.mrf.mxu1 }
 0x897   : > { %v1425_v1 = vmul.f32 0.35355338, %v1421_v0 }
 0x899   : > { %v1426_v4 = vadd.f32 %v1425_v1, %v2679_v50 }
 0x89b   : > { %v1427_v5 = vsel %vm906_vm1, %v1426_v4, -inf }
 0x89c   : > { %1428 = vmax.xlane.f32.xlu0 %v1427_v5  ;;  %v1566_v5 = vsel %vm946_vm2, %v2059_v61, 0 }
 0x89d   : > { %v1379_v7 = vpop.permute.xlu1 %1378  ;;  %1575 = vmatpush.bf16.msra.mxu3 %v1566_v5 }
 0x89e   : > { %v1384_v10 = vsel %vm946_vm2, %v1379_v7, 0  ;;  %v1423_v11 = vpop.f32.mrf.mxu1 }
 0x89f   : > { %1393 = vmatpush.bf16.msrb.mxu0 %v1384_v10 }
 0x8a2   : > { %2051 = vmatmul.msk.bf16.vlgmr.msrb.gmra.mxu0 %vm906_vm1, %v1376_v3 }
 0x8a3   : > { %1495 = vmatpush.bf16.msra.mxu0 %v1486_v8 }
 0x8a5   : > { %v1504_v14 = vpop.permute.xlu1 %1503 }
 0x8a6   : > { %v1509_v15 = vsel %vm906_vm1, %v1504_v14, 0 }
 0x8a7   : > { %1599 = vmatpush.bf16.xpose.msrb.mxu0 %v1590_v13  ;;  %1518 = vmatpush.bf16.xpose.msra.mxu1 %v1509_v15 }
 0x8ad   : > { %v1583_v30 = vpop.permute.xlu1 %1582 }
 0x8ae   : > { %2057 = vmatmul.msk.bf16.vlgmr.msra.gmra.mxu1 %vm906_vm1, %v1502_v17  ;;  %v2063_v17 = vld [vmem:[%s2854_s13 + $0xc] sm:$0xf] }
 0x90f   : > { %v1429_v18 = vpop.xlane.xlu0 %1428 }
 0x910   : > { %v1430_v19 = vsub.f32 %v1426_v4, %v1429_v18  ;;  %v1647_v18 = vsel %vm946_vm2, %v2063_v17, 0 }
 0x912   : > { %v1431_v20 = vmul.f32 1.442695, %v1430_v19 }
 0x914   : > { %2229 = vpow2.f32 %v1431_v20 }
 0x91a   : > { %v2230_v21 = vpop.eup %2229 }
 0x91b   : > { %v1433_v22 = vsel %vm906_vm1, %v2230_v21, 0.0 }
 0x91c   : > { %1434 = vadd.xlane.f32.xlu0 %v1433_v22 }
 0x91f   : > { %v1395_v23 = vpop.f32.mrf.mxu0 }
 0x920   : > { %v1399_v24 = vpack.c.bf16 %v1395_v23, %v1395_v23 }
 0x922   : > { %2056 = vmatmul.msk.bf16.vlgmr.msra.gmra.mxu0 %vm906_vm1, %v1399_v24 }
 0x927   : > { %v1397_v25 = vpop.f32.mrf.mxu0 }
 0x92b   : > { %v1520_v26 = vpop.f32.mrf.mxu1 }
 0x92c   : > { %v1524_v27 = vmul.f32 0.35355338, %v1520_v26  ;;  %v2198_v26 = vld [vmem:[%s2857_s16] ss:$0 sm:$0xff] }
 0x92e   : > { %v1525_v28 = vadd.f32 %v1524_v27, %v2679_v50 }
 0x930   : > { %1538 = vrot.lane.b32.xlu0 %v2661_v40, %s2924_s0  ;;  %v1526_v29 = vsel %vm906_vm1, %v1525_v28, -inf }
 0x931   : > { %1527 = vmax.xlane.f32.xlu2 %v1526_v29 }
 0x932   : > { %2061 = vmatmul.msk.bf16.vlgmr.msrb.gmra.mxu0 %vm906_vm1, %v1583_v30 }
 0x933   : > { %v1522_v31 = vpop.f32.mrf.mxu1 }
 0x949   : > { %1439 = vrot.lane.b32.xlu2 %v2661_v40, %s2925_s24 }
 0x98f   : > { %v1435_v32 = vpop.xlane.xlu0 %1434 }
 0x990   : > { %2231 = vrcp.f32 %v1435_v32 }
 0x996   : > { %v2232_v37 = vpop.eup %2231 }
 0x997   : > { %v1437_v38 = vmul.f32 %v2232_v37, %v2230_v21 }
 0x999   : > { %v1438_v44 = vpack.c.bf16 %v1437_v38, %v1437_v38 }
 0x99f   : > { %v2712_v33 = vpop.f32.mrf.mxu0 }
 0x9a2   : > { %v1539_v39 = vpop.permute.xlu0 %1538 }
 0x9a3   : > { %v1544_v43 = vsel %vm946_vm2, %v1539_v39, 0  ;;  %v2119_v39 = vld [vmem:[%s2858_s17 + $0x8] sm:$0xff] }
 0x9a4   : > { %v1528_v34 = vpop.xlane.xlu2 %1527 }
 0x9a5   : > { %v1529_v16 = vsub.f32 %v1525_v28, %v1528_v34 }
 0x9a7   : > { %v1499_v36 = vpop.f32.mrf.mxu0  ;;  %v1530_v45 = vmul.f32 1.442695, %v1529_v16  ;;  %v2127_v16 = vld [vmem:[%s2860_s19 + $0x38] sm:$0xff] }
 0x9a8   : > { %1804 = vmatpush.bf16.msra.mxu0 %v2127_v16 }
 0x9a9   : > { %2233 = vpow2.f32 %v1530_v45  ;;  %v2125_v45 = vld [vmem:[%s2860_s19 + $0x28] sm:$0xff] }
 0x9ac   : > { %v1440_v41 = vpop.permute.xlu2 %1439 }
 0x9ad   : > { %v1445_v42 = vsel %vm946_vm2, %v1440_v41, 0 }
 0x9ae   : > { %1454 = vmatpush.bf16.msra.mxu2 %v1445_v42 }
 0x9af   : > { %v1601_v46 = vpop.f32.mrf.mxu0  ;;  %v2234_v52 = vpop.eup %2233 }
 0x9b0   : > { %v1605_v47 = vmul.f32 0.35355338, %v1601_v46  ;;  %v1532_v53 = vsel %vm906_vm1, %v2234_v52, 0.0  ;;  %v2124_v46 = vld [vmem:[%s2860_s19 + $0x20] sm:$0xff] }
 0x9b1   : > { %2053 = vmatmul.msk.bf16.vlgmr.msra.gmra.mxu2 %vm906_vm1, %v1438_v44 }
 0x9b2   : > { %1553 = vmatpush.bf16.msrb.mxu2 %v1544_v43  ;;  %v1606_v48 = vadd.f32 %v1605_v47, %v2679_v50  ;;  %v2126_v43 = vld [vmem:[%s2860_s19 + $0x30] sm:$0xff] }
 0x9b3   : > { %1805 = vmatpush.bf16.msra.mxu0 %v2126_v43 }
 0x9b4   : > { %v1607_v49 = vsel %vm906_vm1, %v1606_v48, -inf }
 0x9b5   : > { %1608 = vmax.xlane.f32.xlu1 %v1607_v49  ;;  %v2123_v49 = vld [vmem:[%s2860_s19 + $0x18] sm:$0xff] }
 0x9b6   : > { %1656 = vmatpush.bf16.msra.mxu2 %v1647_v18 }
 0x9b7   : > { %v1603_v51 = vpop.f32.mrf.mxu0  ;;  %1806 = vmatpush.bf16.msra.mxu0 %v2125_v45 }
 0x9bb   : > { %1807 = vmatpush.bf16.msra.mxu0 %v2124_v46 }
 0x9bd   : > { %1533 = vadd.xlane.f32.xlu1 %v1532_v53  ;;  %v2122_v53 = vld [vmem:[%s2860_s19 + $0x10] sm:$0xff] }
 0x9bf   : > { %1808 = vmatpush.bf16.msra.mxu0 %v2123_v49 }
 0x9c3   : > { %1809 = vmatpush.bf16.msra.mxu0 %v2122_v53 }
 0xa28   : > { %v1609_v56 = vpop.xlane.xlu1 %1608 }
 0xa29   : > { %v1610_v57 = vsub.f32 %v1606_v48, %v1609_v56  ;;  %v2199_v56 = vld [vmem:[%s2862_s21 + $0x1] ss:$0 sm:$0xff] }
 0xa2b   : > { %v1611_v58 = vmul.f32 1.442695, %v1610_v57 }
 0xa2d   : > { %2235 = vpow2.f32 %v1611_v58 }
 0xa30   : > { %v1534_v50 = vpop.xlane.xlu1 %1533 }
 0xa31   : > { %2237 = vrcp.f32 %v1534_v50  ;;  %v2200_v50 = vld [vmem:[%s2863_s22 + $0x1] ss:$0 sm:$0xff] }
 0xa33   : > { %v2236_v59 = vpop.eup %2235 }
 0xa34   : > { %v1456_v60 = vpop.f32.mrf.mxu2  ;;  %v1613_v62 = vsel %vm906_vm1, %v2236_v59, 0.0 }
 0xa35   : > { %v1460_v63 = vpack.c.bf16 %v1456_v60, %v1456_v60  ;;  %1614 = vadd.xlane.f32.xlu1 %v1613_v62 }
 0xa37   : > { %v2238_v0 = vpop.eup %2237  ;;  %2055 = vmatmul.msk.bf16.vlgmr.msrb.gmra.mxu3 %vm906_vm1, %v1460_v63  ;;  %v2121_v63 = vld [vmem:[%s2860_s19 + $0x8] sm:$0xff] }
 0xa38   : > { %v1536_v1 = vmul.f32 %v2238_v0, %v2234_v52  ;;  %1727 = vmatpush.bf16.msrb.mxu3 %v2119_v39  ;;  %1810 = vmatpush.bf16.msra.mxu0 %v2121_v63  ;;  %v2120_v0 = vld [vmem:[%s2860_s19] sm:$0xff] }
 0xa3a   : > { %v1537_v2 = vpack.c.bf16 %v1536_v1, %v1536_v1  ;;  %v2201_v1 = vld [vmem:[%s2859_s18] ss:$0 sm:$0xff] }
 0xa3c   : > { %v1458_v4 = vpop.f32.mrf.mxu2  ;;  %2058 = vmatmul.msk.bf16.vlgmr.msrb.gmra.mxu2 %vm906_vm1, %v1537_v2  ;;  %1811 = vmatpush.bf16.msra.mxu0 %v2120_v0 }
 0xa4e   : > { %1619 = vrot.lane.b32.xlu1 %v2661_v40, %s2926_s8  ;;  %s1993_s8 = sshll.u32 %s789_s23, 3 }
 0xa4f   : > { %s791_s3 = scalar_lea.vmem [#allocation2], %s1993_s8  ;;  %s2265_s8 = scalar_lea.hbm %s2927_s26, 16 }
 0xa50   : > { %s1860_s25 = sshll.u32 %s791_s3, 4  ;;  %p2267_p2 = scmp.lt.s32.totalorder %s2265_s8, %s2261_s9  ;;  %s1861_s25 = int_to_ptr.vmem [resolvable:$true] %s1860_s25 }
 0xa52   : > { %p2268_p3 = por %p2267_p2, %p2266_p1 }
 0xa54   : > { %p2269_p5 = pnand %p2268_p3, %p2264_p0 }
 0xaa8   : > { %v1615_v6 = vpop.xlane.xlu1 %1614 }
 0xaa9   : > { %2239 = vrcp.f32 %v1615_v6 }
 0xaaf   : > { %v2240_v8 = vpop.eup %2239 }
 0xab0   : > { %v1617_v10 = vmul.f32 %v2240_v8, %v2236_v59 }
 0xab2   : > { %v1618_v40 = vpack.c.bf16 %v1617_v10, %v1617_v10 }
 0xaba   : > { %v1478_v7 = vpop.f32.mrf.mxu3 }
 0xabb   : > { %v1498_v21 = vadd.f32 %v2712_v33, %v1478_v7  ;;  %v2202_v7 = vld [vmem:[%s2861_s20] ss:$0 sm:$0xff] }
 0xabf   : > { %v1555_v11 = vpop.f32.mrf.mxu2 }
 0xac0   : > { %v1559_v12 = vpack.c.bf16 %v1555_v11, %v1555_v11  ;;  %v1620_v3 = vpop.permute.xlu1 %1619 }
 0xac1   : > { %v1625_v13 = vsel %vm946_vm2, %v1620_v3, 0 }
 0xac2   : > { %v1480_v14 = vpop.f32.mrf.mxu3  ;;  %2060 = vmatmul.msk.bf16.vlgmr.msra.gmra.mxu3 %vm906_vm1, %v1559_v12  ;;  %1634 = vmatpush.bf16.msrb.mxu1 %v1625_v13 }
 0xac5   : > { %2062 = vmatmul.msk.bf16.vlgmr.msrb.gmra.mxu1 %vm906_vm1, %v1618_v40 }
 0xac7   : > { %v1557_v15 = vpop.f32.mrf.mxu2 }
 0xb42   : > { %v1636_v19 = vpop.f32.mrf.mxu1 }
 0xb43   : > { %v1640_v20 = vpack.c.bf16 %v1636_v19, %v1636_v19 }
 0xb45   : > { %v1577_v22 = vpop.f32.mrf.mxu3  ;;  %2064 = vmatmul.msk.bf16.vlgmr.msra.gmra.mxu2 %vm906_vm1, %v1640_v20 }
 0xb46   : > { %v1581_v23 = vadd.f32 %v1577_v22, %v1498_v21 }
 0xb4a   : > { %v1638_v24 = vpop.f32.mrf.mxu1 }
 0xb4d   : > { %v1579_v25 = vpop.f32.mrf.mxu3 }
 0xbc8   : > { %v1658_v27 = vpop.f32.mrf.mxu2 }
 0xbc9   : > { %v1662_v28 = vadd.f32 %v1658_v27, %v1581_v23 }
 0xbcb   : > { %v1667_v29 = vadd.f32 %v2198_v26, %v1662_v28  ;;  %v2203_v26 = vld [vmem:[%s2862_s21 + $0x2] ss:$0 sm:$0xff] }
 0xbcc   : > { %v2204_v28 = vld [vmem:[%s2863_s22 + $0x2] ss:$0 sm:$0xff] }
 0xbcd   : > { %v1668_v30 = vadd.f32 %v1667_v29, %v2653_v35  ;;  %v2118_v35 = vld [vmem:[%s2858_s17] sm:$0xff] }
 0xbce   : > { %1728 = vmatpush.bf16.msrb.mxu3 %v2118_v35 }
 0xbcf   : > { %v1671_v31 = vsel %vm850_vm0, %v1668_v30, 0.0 }
 0xbd0   : > { %v1660_v32 = vpop.f32.mrf.mxu2  ;;  %1672 = vadd.xlane.f32.xlu2 %v1671_v31 }
 0xc43   : > { %v1673_v33 = vpop.xlane.xlu2 %1672 }
 0xc44   : > { %v1674_v34 = vmul.f32 %v1673_v33, %v2625_v9 }
 0xc46   : > { %v1675_v36 = vsub.f32 %v1668_v30, %v1674_v34 }
 0xc48   : > { %v1676_v37 = vmul.f32 %v1675_v36, %v1675_v36 }
 0xc4a   : > { %v1677_v38 = vsel %vm850_vm0, %v1676_v37, 0.0 }
 0xc4b   : > { %1678 = vadd.xlane.f32.xlu0 %v1677_v38 }
 0xcbe   : > { %v1679_v41 = vpop.xlane.xlu0 %1678 }
 0xcbf   : > { %v1680_v42 = vmul.f32 %v1679_v41, %v2625_v9 }
 0xcc1   : > { %v1681_v44 = vadd.f32 1e-06, %v1680_v42 }
 0xcc3   : > { %2241 = vrsqrt.f32 %v1681_v44  ;;  %vm1688_vm8 = vweird.f32 %v1681_v44 }
 0xcc9   : > { %v2242_v47 = vpop.eup %2241 }
 0xcca   : > { %v1683_v48 = vmul.f32 %v2242_v47, %v1681_v44  ;;  %vm1689_vm7 = vweird.f32 %v2242_v47 }
 0xccb   : > { %vm1690_vm9 = vmor %vm1688_vm8, %vm1689_vm7 }
 0xccc   : > { %v1684_v51 = vmul.f32 %v2242_v47, %v1683_v48 }
 0xcce   : > { %v1685_v52 = vmul.f32 0.5, %v1684_v51 }
 0xcd0   : > { %v1686_v54 = vsub.f32 1.5, %v1685_v52 }
 0xcd2   : > { %v1687_v55 = vmul.f32 %v2242_v47, %v1686_v54 }
 0xcd4   : > { %v1691_v57 = vsel %vm1690_vm9, %v2242_v47, %v1687_v55 }
 0xcd5   : > { %v1692_v58 = vmul.f32 %v1691_v57, %v1675_v36 }
 0xcd7   : > { %v1694_v59 = vmul.f32 %v2199_v56, %v1692_v58 }
 0xcd9   : > { %v1696_v60 = vadd.f32 %v2200_v50, %v1694_v59 }
 0xcdb   : > { %v1697_v62 = vpack.c.bf16 %v1696_v60, %v1696_v60 }
 0xcdd   : > { %2073 = vmatmul.msk.bf16.vlgmr.msrb.gmra.mxu3 %vm850_vm0, %v1697_v62 }
 0xd60   : > { %v1730_v2 = vpop.f32.mrf.mxu3 }
 0xd61   : > { %v1731_v4 = vadd.f32 %v2201_v1, %v1730_v2 }
 0xd63   : > { %v1734_v61 = vmax.f32 %v1731_v4, 0.0 }
 0xd65   : > { %v1735_v5 = vpack.c.bf16 %v1734_v61, %v1734_v61 }
 0xd67   : > { %1812 = vmatmul.bf16.vlgmr.msra.gmra.mxu0 %v1735_v5 }
 0xd68   : > { %v1732_v6 = vpop.f32.mrf.mxu3 }
 0xde4   : > { %v1813_v8 = vpop.f32.mrf.mxu0 }
 0xde5   : > { %v1814_v10 = vadd.f32 %v2202_v7, %v1813_v8 }
 0xde7   : > { %v1819_v11 = vsel %vm850_vm0, %v1814_v10, 0.0 }
 0xde8   : > { %1820 = vadd.xlane.f32.xlu1 %v1819_v11 }
 0xdec   : > { %v1815_v12 = vpop.f32.mrf.mxu0 }
 0xe5b   : > { %v1821_v3 = vpop.xlane.xlu1 %1820 }
 0xe5c   : > { %v1822_v13 = vmul.f32 %v1821_v3, %v2625_v9 }
 0xe5e   : > { %v1823_v14 = vsub.f32 %v1814_v10, %v1822_v13 }
 0xe60   : > { %v1824_v40 = vmul.f32 %v1823_v14, %v1823_v14 }
 0xe62   : > { %v1825_v15 = vsel %vm850_vm0, %v1824_v40, 0.0 }
 0xe63   : > { %1826 = vadd.xlane.f32.xlu2 %v1825_v15 }
 0xed6   : > { %v1827_v17 = vpop.xlane.xlu2 %1826 }
 0xed7   : > { %v1828_v18 = vmul.f32 %v1827_v17, %v2625_v9 }
 0xed9   : > { %v1829_v19 = vadd.f32 1e-06, %v1828_v18 }
 0xedb   : > { %2243 = vrsqrt.f32 %v1829_v19  ;;  %vm1836_vm11 = vweird.f32 %v1829_v19 }
 0xee1   : > { %v2244_v20 = vpop.eup %2243 }
 0xee2   : > { %v1831_v21 = vmul.f32 %v2244_v20, %v1829_v19  ;;  %vm1837_vm10 = vweird.f32 %v2244_v20 }
 0xee3   : > { %vm1838_vm12 = vmor %vm1836_vm11, %vm1837_vm10 }
 0xee4   : > { %v1832_v22 = vmul.f32 %v2244_v20, %v1831_v21 }
 0xee6   : > { %v1833_v23 = vmul.f32 0.5, %v1832_v22 }
 0xee8   : > { %v1834_v24 = vsub.f32 1.5, %v1833_v23 }
 0xeea   : > { %v1835_v25 = vmul.f32 %v2244_v20, %v1834_v24 }
 0xeec   : > { %v1839_v9 = vsel %vm1838_vm12, %v2244_v20, %v1835_v25 }
 0xeed   : > { %v1840_v27 = vmul.f32 %v1839_v9, %v1823_v14 }
 0xeef   : > { %v1842_v29 = vmul.f32 %v2203_v26, %v1840_v27 }
 0xef1   : > { %v1844_v30 = vadd.f32 %v2204_v28, %v1842_v29 }
 0xef3   : > { %1845 = vst.msk [vmem:[%s791_s3] sm:$0xff] %vm850_vm0, %v1844_v30 }
 0xef4   : > { %2272 = shalt.err (!%p2269_p5)
}
 0xef5   : > { %2128 = dma.vmem_to_hbm [thread:$0]  (%p2493_p4), %s1861_s25, 128, %s1863_s10, %s1847_s6  }
 0xef6 PF: > { %s2928_s23 = sld [smem:[#allocation5_spill]]  ;;  %p2134_p6 = scmp.ge.s32.totalorder %s2323_s1, 2 }
 0xef8   : > { %p2131_p7 = pnand %p2134_p6, %p2500_p8 }
 0xefa   : > { %p2132_p9 = pneg %p2131_p7 }
 0xefc   : > { %s1874_s3 = sand.u32 1, %s2928_s23  }
 0xefd   : > { %s1875_s4 = scalar_lea.sflag [#allocation3], %s1874_s3 }
 0xefe   : > { %2298 = dma.done.wait (%p2132_p9), %s1875_s4, 128  }
 0xeff   : > { %2300 = vsyncadd (%p2132_p9), %s1875_s4, 4294967168  ;;  %s36_s1 = sadd.s32 1, %s2323_s1   ;;  %s2930_s2 = sld [smem:[#allocation6_spill]] }
 0xf00   : > { %p33_p10 = scmp.ge.s32.totalorder %s36_s1, 4   ;;  %s2931_s24 = sld [smem:[#allocation10_spill]] }
 0xf01   : > { %s2932_s25 = sld [smem:[#allocation7_spill]]  ;;  %s2934_s4 = smov %s2307_s30 }
 0xf02   : > { %s2933_s5 = sld [smem:[#allocation8_spill]]  ;;  %35 = sbr.rel (!%p33_p10) target bundleno = 17 (0x11), region = 165 }
 0xf05   : > { %s2935_s30 = smov %s2930_s2 }
 0xf07   :  { %1881 = vsyncpa [#allocation3], 1 }
 0xf08   :  { %1883 = vsyncpa [#allocation3 + $0x1], 1 }

</bundles_post_ra>
